<compile_context>
chip_gen: v7x
topology: tpu7x:2x2x1
jax: 0.10.0
libtpu: 0.0.40
codegen_flags: <defaults>
</compile_context>

<pallas_src>
import math
import jax
import jax.numpy as jnp
from jax.experimental import pallas as pl
from jax.experimental.pallas import tpu as pltpu


def _round_up(a, m):
    return pl.cdiv(a, m) * m


# ------------------------------ helpers -------------------------------------

def _nearest_interp(inst, out_hw):
    # F.interpolate(mode='nearest'): src_idx = floor(dst_idx * in/out)
    N, C, Hi, Wi = inst.shape
    Ho, Wo = out_hw
    ri = jnp.floor(jnp.arange(Ho) * (Hi / Ho)).astype(jnp.int32)
    ci = jnp.floor(jnp.arange(Wo) * (Wi / Wo)).astype(jnp.int32)
    return inst[:, :, ri, :][:, :, :, ci]


def _unfold(x, kw, stride, padding):
    # torch.nn.Unfold: (N, C, H, W) -> (N, C, kw*kw, L), tap index k = i*kw + j
    N, C, H, W = x.shape
    xp = jnp.pad(x, ((0, 0), (0, 0), (padding, padding), (padding, padding)))
    OH = (H + 2 * padding - kw) // stride + 1
    OW = (W + 2 * padding - kw) // stride + 1
    patches = []
    for i in range(kw):
        for j in range(kw):
            patches.append(xp[:, :, i:i + stride * OH:stride,
                                    j:j + stride * OW:stride])
    p = jnp.stack(patches, axis=2)                 # (N, C, kw*kw, OH, OW)
    return p.reshape(N, C, kw * kw, OH * OW), OH, OW


# --------------------------- reference (pure JAX, f32) -----------------------

def _reference(x, instances, weight, bias, kw, stride, padding):
    N, C, H, W = x.shape
    fout = weight.shape[0]
    inst = _nearest_interp(instances, (H, W))
    x_unf, OH, OW = _unfold(x, kw, stride, padding)          # (N, C, K2, L)
    inst_unf, _, _ = _unfold(inst, kw, stride, padding)
    inst_unf = inst_unf[:, 0]                                 # (N, K2, L)
    center = inst_unf[:, kw * kw // 2, :][:, None, :]
    mask = 1.0 - jnp.clip(jnp.abs(inst_unf - center), 0.0, 1.0)
    mask_x = (mask[:, None, :, :] * x_unf).reshape(N, C * kw * kw, -1)
    w2d = weight.reshape(fout, -1)
    out = jnp.einsum('cm,nml->ncl', w2d, mask_x) + bias[None, :, None]
    return out.reshape(N, fout, OH, OW)


# ----------------------------- Pallas kernel --------------------------------

def _make_kernel(kw, Wp, Lt):
    K2 = kw * kw
    ic, jc = divmod(K2 // 2, kw)          # centre tap of the unfold
    dc = ic * Wp + jc                     # its flat shift
    taps = [(i, j) for i in range(kw) for j in range(kw)]

    def kernel(w_ref, b_ref, xa_ref, xb_ref, ia_ref, ib_ref, o_ref,
               xs_ref, is_ref):
        # w_ref : (K2, Fp, C) bf16  VMEM-resident (constant index map)
        # b_ref : (Fp, 1)     f32   VMEM-resident
        # xa/xb : (C, Lt)     bf16  current / next flat chunk of padded x
        # ia/ib : (1, Lt)     bf16  current / next flat chunk of instance map
        # o_ref : (Fp, Lt)    f32
        # xs_ref: (C, 2*Lt)   bf16  scratch: stitched chunks (static tap slices)
        # is_ref: (1, 2*Lt)   bf16  scratch: stitched instance chunks
        xs_ref[:, :Lt] = xa_ref[...]
        xs_ref[:, Lt:] = xb_ref[...]
        is_ref[:, :Lt] = ia_ref[...]
        is_ref[:, Lt:] = ib_ref[...]

        center = is_ref[:, dc:dc + Lt].astype(jnp.float32)             # (1, Lt)
        acc = jnp.zeros(o_ref.shape, jnp.float32)                       # (Fp, Lt)
        for k, (i, j) in enumerate(taps):                               # unrolled, K2 taps
            d = i * Wp + j                                              # static flat shift
            x_k = xs_ref[:, d:d + Lt]                                   # (C, Lt) bf16
            inst_k = is_ref[:, d:d + Lt].astype(jnp.float32)            # (1, Lt) f32
            m_k = 1.0 - jnp.clip(jnp.abs(inst_k - center), 0.0, 1.0)    # (1, Lt) f32
            # MXU: per-tap (Fp,C)x(C,Lt) with f32 accumulation; the mask hits the
            # small f32 result, never the bf16 x tile element-wise.
            t_k = jnp.dot(w_ref[k], x_k, preferred_element_type=jnp.float32)
            acc = acc + t_k * m_k
        o_ref[...] = acc + b_ref[...]

    return kernel


# ------------------------------ JAX glue -------------------------------------

def instance_aware_conv2d(x, instances, weight, bias, kw, stride, padding,
                          *, lt_cap=None):
    N, C, H, W = x.shape
    fout = weight.shape[0]
    K2 = kw * kw

    if stride != 1:
        # TODO(synk): strided tap gathers break the contiguous flat-shift trick;
        # use the pure-JAX path for non-unit stride.
        return _reference(x, instances, weight, bias, kw, stride, padding)

    Hp, Wp = H + 2 * padding, W + 2 * padding
    OH = (H + 2 * padding - kw) // stride + 1
    OW = (W + 2 * padding - kw) // stride + 1

    # nearest-resize instance map to x's resolution (torch 'nearest', not 'nearest-exact')
    inst = _nearest_interp(instances, (H, W))                    # (N, 1, H, W)

    # generation-aware tile cap / VMEM limit.
    try:
        info = pltpu.get_tpu_info()
        vmem_cap = int(getattr(info, "vmem_capacity_bytes", 64 * 1024 * 1024))
    except Exception:
        vmem_cap = 64 * 1024 * 1024
    if lt_cap is None:
        lt_cap = 1024 if vmem_cap <= 64 * 1024 * 1024 else 2048
    vmem_limit = int(min(100 * 1024 * 1024, (vmem_cap * 3) // 4))

    # Pseudo-output: OH rows of Wp columns (right-edge columns are over-computed
    # garbage, sliced off below).  Minimal-padding lane-dense Lt choice.
    Lps = OH * Wp
    halo = (kw - 1) * (Wp + 1)                      # largest flat tap shift
    num_lt = max(1, pl.cdiv(Lps, lt_cap))
    Lt = max(_round_up(pl.cdiv(Lps, num_lt), 128), _round_up(halo, 128))
    Lout = num_lt * Lt
    Lx = (num_lt + 1) * Lt                          # +1 chunk so the "next" block is in range

    # pad + flatten x / inst to (N,C,Lx) / (N,1,Lx); bf16 streams, f32 accumulation.
    xp = jnp.pad(x, ((0, 0), (0, 0), (padding, padding), (padding, padding)))
    xf = xp.astype(jnp.bfloat16).reshape(N, C, Hp * Wp)
    xf = jnp.pad(xf, ((0, 0), (0, 0), (0, Lx - Hp * Wp)))
    ip = jnp.pad(inst, ((0, 0), (0, 0), (padding, padding), (padding, padding)))
    itf = ip.astype(jnp.bfloat16).reshape(N, 1, Hp * Wp)
    itf = jnp.pad(itf, ((0, 0), (0, 0), (0, Lx - Hp * Wp)))

    # per-tap weights (K2, Fp, C); fout padded to a multiple of 8.
    Fp = _round_up(fout, 8)
    wk = jnp.transpose(weight, (2, 3, 0, 1)).reshape(K2, fout, C)
    wk = jnp.pad(wk, ((0, 0), (0, Fp - fout), (0, 0))).astype(jnp.bfloat16)
    b2 = jnp.pad(bias, (0, Fp - fout)).reshape(Fp, 1).astype(jnp.float32)

    kernel = _make_kernel(kw, Wp, Lt)

    flops = 2 * N * Fp * C * K2 * Lout
    bytes_accessed = (2 * xf.size * 2 + 2 * itf.size * 2 + wk.size * 2
                      + b2.size * 4 + N * Fp * Lout * 4)

    out = pl.pallas_call(
        kernel,
        out_shape=jax.ShapeDtypeStruct((N, Fp, Lout), jnp.float32),
        grid_spec=pltpu.PrefetchScalarGridSpec(
            num_scalar_prefetch=0,
            grid=(N, num_lt),
            in_specs=[
                pl.BlockSpec((K2, Fp, C), lambda n, t: (0, 0, 0)),     # resident
                pl.BlockSpec((Fp, 1), lambda n, t: (0, 0)),            # resident
                pl.BlockSpec((None, C, Lt), lambda n, t: (n, 0, t)),       # x cur
                pl.BlockSpec((None, C, Lt), lambda n, t: (n, 0, t + 1)),   # x next (halo)
                pl.BlockSpec((None, 1, Lt), lambda n, t: (n, 0, t)),       # inst cur
                pl.BlockSpec((None, 1, Lt), lambda n, t: (n, 0, t + 1)),   # inst next
            ],
            out_specs=pl.BlockSpec((None, Fp, Lt), lambda n, t: (n, 0, t)),
            scratch_shapes=[
                pltpu.VMEM((C, 2 * Lt), jnp.bfloat16),
                pltpu.VMEM((1, 2 * Lt), jnp.bfloat16),
            ]),
        compiler_params=pltpu.CompilerParams(
            dimension_semantics=("parallel", "parallel"),
            vmem_limit_bytes=vmem_limit),
        cost_estimate=pl.CostEstimate(flops=flops, transcendentals=0,
                                      bytes_accessed=bytes_accessed),
    )(wk, b2, xf, xf, itf, itf)

    # drop fout padding, drop pseudo-L padding, drop over-computed right-edge cols.
    out = out[:, :fout, :Lps].reshape(N, fout, OH, Wp)[..., :OW]
    # Equals the module's view(N, fout, H//stride, W//stride) whenever that view
    # is legal (e.g. kw=3, padding=1); (OH, OW) is the general output shape.
    return out


# ------------------------------- main ----------------------------------------

if __name__ == "__main__":
    fin, fout, kw, stride, padding = 4, 8, 3, 1, 1
    N, H, W = 2, 16, 16

    key = jax.random.PRNGKey(0)
    k_x, k_inst, k_w, k_b = jax.random.split(key, 4)

    # Deterministic init matching nn.Module.__init__ semantics:
    # kaiming_uniform_(a=sqrt(5)) -> U(-1/sqrt(fan_in), 1/sqrt(fan_in)); same bound for bias.
    fan_in = fin * kw * kw
    bound = 1.0 / math.sqrt(fan_in)
    weight = jax.random.uniform(k_w, (fout, fin, kw, kw), jnp.float32,
                                minval=-bound, maxval=bound)
    bias = jax.random.uniform(k_b, (fout,), jnp.float32,
                              minval=-bound, maxval=bound)

    x = jax.random.normal(k_x, (N, fin, H, W), jnp.float32)
    # instance-id map at half resolution (exercises nearest interp), integer ids
    instances = jax.random.randint(k_inst, (N, 1, H // 2, W // 2), 0, 4
                                   ).astype(jnp.float32)

    out = instance_aware_conv2d(x, instances, weight, bias, kw, stride, padding)
    out = jax.block_until_ready(out)

    ref = _reference(x, instances, weight, bias, kw, stride, padding)
    assert out.shape == (N, fout, H // stride, W // stride)
    # bf16 matmul operands (f32 accumulation) -> slightly looser tolerance than f32.
    assert jnp.allclose(out, ref, atol=3e-2, rtol=1e-2), \
        float(jnp.max(jnp.abs(out - ref)))

    print("KERNEL_OK")
</pallas_src>

<mosaic_0001>
module attributes {stable_mosaic.version = 11 : i64} {
  func.func @kernel(%arg0: i32, %arg1: i32, %arg2: memref<9x8x4xbf16, #tpu.memory_space<vmem>>, %arg3: memref<8x1xf32, #tpu.memory_space<vmem>>, %arg4: memref<1x4x384xbf16, #tpu.memory_space<vmem>>, %arg5: memref<1x4x384xbf16, #tpu.memory_space<vmem>>, %arg6: memref<1x1x384xbf16, #tpu.memory_space<vmem>>, %arg7: memref<1x1x384xbf16, #tpu.memory_space<vmem>>, %arg8: memref<1x8x384xf32, #tpu.memory_space<vmem>>, %arg9: memref<4x768xbf16, #tpu.memory_space<vmem>>, %arg10: memref<1x768xbf16, #tpu.memory_space<vmem>>) attributes {dimension_semantics = [#tpu.dimension_semantics<parallel>, #tpu.dimension_semantics<parallel>], iteration_bounds = array<i64: 2, 1>, scalar_prefetch = 0 : i64, scratch_operands = 2 : i64, tpu.core_type = #tpu.core_type<tc>, window_params = [{pipeline_mode = #tpu.pipeline_mode<synchronous>, transform_indices = @transform_0, window_bounds = array<i64: 9, 8, 4>}, {pipeline_mode = #tpu.pipeline_mode<synchronous>, transform_indices = @transform_1, window_bounds = array<i64: 8, 1>}, {transform_indices = @transform_2, window_bounds = array<i64: 1, 4, 384>}, {transform_indices = @transform_3, window_bounds = array<i64: 1, 4, 384>}, {transform_indices = @transform_4, window_bounds = array<i64: 1, 1, 384>}, {transform_indices = @transform_5, window_bounds = array<i64: 1, 1, 384>}, {transform_indices = @transform_6, window_bounds = array<i64: 1, 8, 384>}]} {
    %c0 = arith.constant 0 : index
    %c0_0 = arith.constant 0 : index
    %c0_1 = arith.constant 0 : index
    %0 = vector.load %arg4[%c0, %c0_0, %c0_1] : memref<1x4x384xbf16, #tpu.memory_space<vmem>>, vector<1x4x384xbf16>
    %1 = vector.shape_cast %0 : vector<1x4x384xbf16> to vector<4x384xbf16>
    %c0_2 = arith.constant 0 : index
    %c0_3 = arith.constant 0 : index
    %2 = vector.load %arg9[%c0_2, %c0_3] : memref<4x768xbf16, #tpu.memory_space<vmem>>, vector<4x384xbf16>
    tpu.vector_store %arg9[%c0_2, %c0_3], %1 {strides = array<i32>} : memref<4x768xbf16, #tpu.memory_space<vmem>>, vector<4x384xbf16>,
    %c0_4 = arith.constant 0 : index
    %c0_5 = arith.constant 0 : index
    %c0_6 = arith.constant 0 : index
    %3 = vector.load %arg5[%c0_4, %c0_5, %c0_6] : memref<1x4x384xbf16, #tpu.memory_space<vmem>>, vector<1x4x384xbf16>
    %4 = vector.shape_cast %3 : vector<1x4x384xbf16> to vector<4x384xbf16>
    %c0_7 = arith.constant 0 : index
    %c384 = arith.constant 384 : index
    %5 = vector.load %arg9[%c0_7, %c384] : memref<4x768xbf16, #tpu.memory_space<vmem>>, vector<4x384xbf16>
    tpu.vector_store %arg9[%c0_7, %c384], %4 {strides = array<i32>} : memref<4x768xbf16, #tpu.memory_space<vmem>>, vector<4x384xbf16>,
    %c0_8 = arith.constant 0 : index
    %c0_9 = arith.constant 0 : index
    %c0_10 = arith.constant 0 : index
    %6 = vector.load %arg6[%c0_8, %c0_9, %c0_10] : memref<1x1x384xbf16, #tpu.memory_space<vmem>>, vector<1x1x384xbf16>
    %7 = vector.shape_cast %6 : vector<1x1x384xbf16> to vector<1x384xbf16>
    %c0_11 = arith.constant 0 : index
    %c0_12 = arith.constant 0 : index
    %8 = vector.load %arg10[%c0_11, %c0_12] : memref<1x768xbf16, #tpu.memory_space<vmem>>, vector<1x384xbf16>
    tpu.vector_store %arg10[%c0_11, %c0_12], %7 {strides = array<i32>} : memref<1x768xbf16, #tpu.memory_space<vmem>>, vector<1x384xbf16>,
    %c0_13 = arith.constant 0 : index
    %c0_14 = arith.constant 0 : index
    %c0_15 = arith.constant 0 : index
    %9 = vector.load %arg7[%c0_13, %c0_14, %c0_15] : memref<1x1x384xbf16, #tpu.memory_space<vmem>>, vector<1x1x384xbf16>
    %10 = vector.shape_cast %9 : vector<1x1x384xbf16> to vector<1x384xbf16>
    %c0_16 = arith.constant 0 : index
    %c384_17 = arith.constant 384 : index
    %11 = vector.load %arg10[%c0_16, %c384_17] : memref<1x768xbf16, #tpu.memory_space<vmem>>, vector<1x384xbf16>
    tpu.vector_store %arg10[%c0_16, %c384_17], %10 {strides = array<i32>} : memref<1x768xbf16, #tpu.memory_space<vmem>>, vector<1x384xbf16>,
    %c0_18 = arith.constant 0 : index
    %c19 = arith.constant 19 : index
    %12 = vector.load %arg10[%c0_18, %c19] : memref<1x768xbf16, #tpu.memory_space<vmem>>, vector<1x384xbf16>
    %13 = arith.extf %12 : vector<1x384xbf16> to vector<1x384xf32>
    %cst = arith.constant 0.000000e+00 : f32
    %14 = vector.broadcast %cst : f32 to vector<8x384xf32>
    %c0_19 = arith.constant 0 : index
    %c0_20 = arith.constant 0 : index
    %15 = vector.load %arg9[%c0_19, %c0_20] : memref<4x768xbf16, #tpu.memory_space<vmem>>, vector<4x384xbf16>
    %c0_21 = arith.constant 0 : index
    %c0_22 = arith.constant 0 : index
    %16 = vector.load %arg10[%c0_21, %c0_22] : memref<1x768xbf16, #tpu.memory_space<vmem>>, vector<1x384xbf16>
    %17 = arith.extf %16 : vector<1x384xbf16> to vector<1x384xf32>
    %18 = arith.subf %17, %13 : vector<1x384xf32>
    %19 = math.absf %18 : vector<1x384xf32>
    %cst_23 = arith.constant 0.000000e+00 : f32
    %cst_24 = arith.constant 1.000000e+00 : f32
    %20 = vector.broadcast %cst_23 : f32 to vector<1x384xf32>
    %21 = arith.maximumf %20, %19 : vector<1x384xf32>
    %22 = vector.broadcast %cst_24 : f32 to vector<1x384xf32>
    %23 = arith.minimumf %22, %21 : vector<1x384xf32>
    %cst_25 = arith.constant 1.000000e+00 : f32
    %24 = vector.broadcast %cst_25 : f32 to vector<1x384xf32>
    %25 = arith.subf %24, %23 : vector<1x384xf32>
    %c0_26 = arith.constant 0 : index
    %c0_27 = arith.constant 0 : index
    %c0_28 = arith.constant 0 : index
    %26 = vector.load %arg2[%c0_26, %c0_27, %c0_28] : memref<9x8x4xbf16, #tpu.memory_space<vmem>>, vector<1x8x4xbf16>
    %27 = vector.shape_cast %26 : vector<1x8x4xbf16> to vector<8x4xbf16>
    %cst_29 = arith.constant dense<0.000000e+00> : vector<8x384xf32>
    %28 = tpu.matmul %27, %15, %cst_29 {dimension_numbers = #tpu.dot_dimension_numbers<[1], [0], [0], [1], [0, 0, 1, 1], [], []>} : vector<8x4xbf16>, vector<4x384xbf16>, vector<8x384xf32> -> vector<8x384xf32>
    %29 = vector.broadcast %25 : vector<1x384xf32> to vector<8x384xf32>
    %30 = arith.mulf %28, %29 : vector<8x384xf32>
    %31 = arith.addf %14, %30 : vector<8x384xf32>
    %c0_30 = arith.constant 0 : index
    %c1 = arith.constant 1 : index
    %32 = vector.load %arg9[%c0_30, %c1] : memref<4x768xbf16, #tpu.memory_space<vmem>>, vector<4x384xbf16>
    %c0_31 = arith.constant 0 : index
    %c1_32 = arith.constant 1 : index
    %33 = vector.load %arg10[%c0_31, %c1_32] : memref<1x768xbf16, #tpu.memory_space<vmem>>, vector<1x384xbf16>
    %34 = arith.extf %33 : vector<1x384xbf16> to vector<1x384xf32>
    %35 = arith.subf %34, %13 : vector<1x384xf32>
    %36 = math.absf %35 : vector<1x384xf32>
    %cst_33 = arith.constant 0.000000e+00 : f32
    %cst_34 = arith.constant 1.000000e+00 : f32
    %37 = vector.broadcast %cst_33 : f32 to vector<1x384xf32>
    %38 = arith.maximumf %37, %36 : vector<1x384xf32>
    %39 = vector.broadcast %cst_34 : f32 to vector<1x384xf32>
    %40 = arith.minimumf %39, %38 : vector<1x384xf32>
    %cst_35 = arith.constant 1.000000e+00 : f32
    %41 = vector.broadcast %cst_35 : f32 to vector<1x384xf32>
    %42 = arith.subf %41, %40 : vector<1x384xf32>
    %c1_36 = arith.constant 1 : index
    %c0_37 = arith.constant 0 : index
    %c0_38 = arith.constant 0 : index
    %43 = vector.load %arg2[%c1_36, %c0_37, %c0_38] : memref<9x8x4xbf16, #tpu.memory_space<vmem>>, vector<1x8x4xbf16>
    %44 = vector.shape_cast %43 : vector<1x8x4xbf16> to vector<8x4xbf16>
    %cst_39 = arith.constant dense<0.000000e+00> : vector<8x384xf32>
    %45 = tpu.matmul %44, %32, %cst_39 {dimension_numbers = #tpu.dot_dimension_numbers<[1], [0], [0], [1], [0, 0, 1, 1], [], []>} : vector<8x4xbf16>, vector<4x384xbf16>, vector<8x384xf32> -> vector<8x384xf32>
    %46 = vector.broadcast %42 : vector<1x384xf32> to vector<8x384xf32>
    %47 = arith.mulf %45, %46 : vector<8x384xf32>
    %48 = arith.addf %31, %47 : vector<8x384xf32>
    %c0_40 = arith.constant 0 : index
    %c2 = arith.constant 2 : index
    %49 = vector.load %arg9[%c0_40, %c2] : memref<4x768xbf16, #tpu.memory_space<vmem>>, vector<4x384xbf16>
    %c0_41 = arith.constant 0 : index
    %c2_42 = arith.constant 2 : index
    %50 = vector.load %arg10[%c0_41, %c2_42] : memref<1x768xbf16, #tpu.memory_space<vmem>>, vector<1x384xbf16>
    %51 = arith.extf %50 : vector<1x384xbf16> to vector<1x384xf32>
    %52 = arith.subf %51, %13 : vector<1x384xf32>
    %53 = math.absf %52 : vector<1x384xf32>
    %cst_43 = arith.constant 0.000000e+00 : f32
    %cst_44 = arith.constant 1.000000e+00 : f32
    %54 = vector.broadcast %cst_43 : f32 to vector<1x384xf32>
    %55 = arith.maximumf %54, %53 : vector<1x384xf32>
    %56 = vector.broadcast %cst_44 : f32 to vector<1x384xf32>
    %57 = arith.minimumf %56, %55 : vector<1x384xf32>
    %cst_45 = arith.constant 1.000000e+00 : f32
    %58 = vector.broadcast %cst_45 : f32 to vector<1x384xf32>
    %59 = arith.subf %58, %57 : vector<1x384xf32>
    %c2_46 = arith.constant 2 : index
    %c0_47 = arith.constant 0 : index
    %c0_48 = arith.constant 0 : index
    %60 = vector.load %arg2[%c2_46, %c0_47, %c0_48] : memref<9x8x4xbf16, #tpu.memory_space<vmem>>, vector<1x8x4xbf16>
    %61 = vector.shape_cast %60 : vector<1x8x4xbf16> to vector<8x4xbf16>
    %cst_49 = arith.constant dense<0.000000e+00> : vector<8x384xf32>
    %62 = tpu.matmul %61, %49, %cst_49 {dimension_numbers = #tpu.dot_dimension_numbers<[1], [0], [0], [1], [0, 0, 1, 1], [], []>} : vector<8x4xbf16>, vector<4x384xbf16>, vector<8x384xf32> -> vector<8x384xf32>
    %63 = vector.broadcast %59 : vector<1x384xf32> to vector<8x384xf32>
    %64 = arith.mulf %62, %63 : vector<8x384xf32>
    %65 = arith.addf %48, %64 : vector<8x384xf32>
    %c0_50 = arith.constant 0 : index
    %c18 = arith.constant 18 : index
    %66 = vector.load %arg9[%c0_50, %c18] : memref<4x768xbf16, #tpu.memory_space<vmem>>, vector<4x384xbf16>
    %c0_51 = arith.constant 0 : index
    %c18_52 = arith.constant 18 : index
    %67 = vector.load %arg10[%c0_51, %c18_52] : memref<1x768xbf16, #tpu.memory_space<vmem>>, vector<1x384xbf16>
    %68 = arith.extf %67 : vector<1x384xbf16> to vector<1x384xf32>
    %69 = arith.subf %68, %13 : vector<1x384xf32>
    %70 = math.absf %69 : vector<1x384xf32>
    %cst_53 = arith.constant 0.000000e+00 : f32
    %cst_54 = arith.constant 1.000000e+00 : f32
    %71 = vector.broadcast %cst_53 : f32 to vector<1x384xf32>
    %72 = arith.maximumf %71, %70 : vector<1x384xf32>
    %73 = vector.broadcast %cst_54 : f32 to vector<1x384xf32>
    %74 = arith.minimumf %73, %72 : vector<1x384xf32>
    %cst_55 = arith.constant 1.000000e+00 : f32
    %75 = vector.broadcast %cst_55 : f32 to vector<1x384xf32>
    %76 = arith.subf %75, %74 : vector<1x384xf32>
    %c3 = arith.constant 3 : index
    %c0_56 = arith.constant 0 : index
    %c0_57 = arith.constant 0 : index
    %77 = vector.load %arg2[%c3, %c0_56, %c0_57] : memref<9x8x4xbf16, #tpu.memory_space<vmem>>, vector<1x8x4xbf16>
    %78 = vector.shape_cast %77 : vector<1x8x4xbf16> to vector<8x4xbf16>
    %cst_58 = arith.constant dense<0.000000e+00> : vector<8x384xf32>
    %79 = tpu.matmul %78, %66, %cst_58 {dimension_numbers = #tpu.dot_dimension_numbers<[1], [0], [0], [1], [0, 0, 1, 1], [], []>} : vector<8x4xbf16>, vector<4x384xbf16>, vector<8x384xf32> -> vector<8x384xf32>
    %80 = vector.broadcast %76 : vector<1x384xf32> to vector<8x384xf32>
    %81 = arith.mulf %79, %80 : vector<8x384xf32>
    %82 = arith.addf %65, %81 : vector<8x384xf32>
    %c0_59 = arith.constant 0 : index
    %c19_60 = arith.constant 19 : index
    %83 = vector.load %arg9[%c0_59, %c19_60] : memref<4x768xbf16, #tpu.memory_space<vmem>>, vector<4x384xbf16>
    %c0_61 = arith.constant 0 : index
    %c19_62 = arith.constant 19 : index
    %84 = vector.load %arg10[%c0_61, %c19_62] : memref<1x768xbf16, #tpu.memory_space<vmem>>, vector<1x384xbf16>
    %85 = arith.extf %84 : vector<1x384xbf16> to vector<1x384xf32>
    %86 = arith.subf %85, %13 : vector<1x384xf32>
    %87 = math.absf %86 : vector<1x384xf32>
    %cst_63 = arith.constant 0.000000e+00 : f32
    %cst_64 = arith.constant 1.000000e+00 : f32
    %88 = vector.broadcast %cst_63 : f32 to vector<1x384xf32>
    %89 = arith.maximumf %88, %87 : vector<1x384xf32>
    %90 = vector.broadcast %cst_64 : f32 to vector<1x384xf32>
    %91 = arith.minimumf %90, %89 : vector<1x384xf32>
    %cst_65 = arith.constant 1.000000e+00 : f32
    %92 = vector.broadcast %cst_65 : f32 to vector<1x384xf32>
    %93 = arith.subf %92, %91 : vector<1x384xf32>
    %c4 = arith.constant 4 : index
    %c0_66 = arith.constant 0 : index
    %c0_67 = arith.constant 0 : index
    %94 = vector.load %arg2[%c4, %c0_66, %c0_67] : memref<9x8x4xbf16, #tpu.memory_space<vmem>>, vector<1x8x4xbf16>
    %95 = vector.shape_cast %94 : vector<1x8x4xbf16> to vector<8x4xbf16>
    %cst_68 = arith.constant dense<0.000000e+00> : vector<8x384xf32>
    %96 = tpu.matmul %95, %83, %cst_68 {dimension_numbers = #tpu.dot_dimension_numbers<[1], [0], [0], [1], [0, 0, 1, 1], [], []>} : vector<8x4xbf16>, vector<4x384xbf16>, vector<8x384xf32> -> vector<8x384xf32>
    %97 = vector.broadcast %93 : vector<1x384xf32> to vector<8x384xf32>
    %98 = arith.mulf %96, %97 : vector<8x384xf32>
    %99 = arith.addf %82, %98 : vector<8x384xf32>
    %c0_69 = arith.constant 0 : index
    %c20 = arith.constant 20 : index
    %100 = vector.load %arg9[%c0_69, %c20] : memref<4x768xbf16, #tpu.memory_space<vmem>>, vector<4x384xbf16>
    %c0_70 = arith.constant 0 : index
    %c20_71 = arith.constant 20 : index
    %101 = vector.load %arg10[%c0_70, %c20_71] : memref<1x768xbf16, #tpu.memory_space<vmem>>, vector<1x384xbf16>
    %102 = arith.extf %101 : vector<1x384xbf16> to vector<1x384xf32>
    %103 = arith.subf %102, %13 : vector<1x384xf32>
    %104 = math.absf %103 : vector<1x384xf32>
    %cst_72 = arith.constant 0.000000e+00 : f32
    %cst_73 = arith.constant 1.000000e+00 : f32
    %105 = vector.broadcast %cst_72 : f32 to vector<1x384xf32>
    %106 = arith.maximumf %105, %104 : vector<1x384xf32>
    %107 = vector.broadcast %cst_73 : f32 to vector<1x384xf32>
    %108 = arith.minimumf %107, %106 : vector<1x384xf32>
    %cst_74 = arith.constant 1.000000e+00 : f32
    %109 = vector.broadcast %cst_74 : f32 to vector<1x384xf32>
    %110 = arith.subf %109, %108 : vector<1x384xf32>
    %c5 = arith.constant 5 : index
    %c0_75 = arith.constant 0 : index
    %c0_76 = arith.constant 0 : index
    %111 = vector.load %arg2[%c5, %c0_75, %c0_76] : memref<9x8x4xbf16, #tpu.memory_space<vmem>>, vector<1x8x4xbf16>
    %112 = vector.shape_cast %111 : vector<1x8x4xbf16> to vector<8x4xbf16>
    %cst_77 = arith.constant dense<0.000000e+00> : vector<8x384xf32>
    %113 = tpu.matmul %112, %100, %cst_77 {dimension_numbers = #tpu.dot_dimension_numbers<[1], [0], [0], [1], [0, 0, 1, 1], [], []>} : vector<8x4xbf16>, vector<4x384xbf16>, vector<8x384xf32> -> vector<8x384xf32>
    %114 = vector.broadcast %110 : vector<1x384xf32> to vector<8x384xf32>
    %115 = arith.mulf %113, %114 : vector<8x384xf32>
    %116 = arith.addf %99, %115 : vector<8x384xf32>
    %c0_78 = arith.constant 0 : index
    %c36 = arith.constant 36 : index
    %117 = vector.load %arg9[%c0_78, %c36] : memref<4x768xbf16, #tpu.memory_space<vmem>>, vector<4x384xbf16>
    %c0_79 = arith.constant 0 : index
    %c36_80 = arith.constant 36 : index
    %118 = vector.load %arg10[%c0_79, %c36_80] : memref<1x768xbf16, #tpu.memory_space<vmem>>, vector<1x384xbf16>
    %119 = arith.extf %118 : vector<1x384xbf16> to vector<1x384xf32>
    %120 = arith.subf %119, %13 : vector<1x384xf32>
    %121 = math.absf %120 : vector<1x384xf32>
    %cst_81 = arith.constant 0.000000e+00 : f32
    %cst_82 = arith.constant 1.000000e+00 : f32
    %122 = vector.broadcast %cst_81 : f32 to vector<1x384xf32>
    %123 = arith.maximumf %122, %121 : vector<1x384xf32>
    %124 = vector.broadcast %cst_82 : f32 to vector<1x384xf32>
    %125 = arith.minimumf %124, %123 : vector<1x384xf32>
    %cst_83 = arith.constant 1.000000e+00 : f32
    %126 = vector.broadcast %cst_83 : f32 to vector<1x384xf32>
    %127 = arith.subf %126, %125 : vector<1x384xf32>
    %c6 = arith.constant 6 : index
    %c0_84 = arith.constant 0 : index
    %c0_85 = arith.constant 0 : index
    %128 = vector.load %arg2[%c6, %c0_84, %c0_85] : memref<9x8x4xbf16, #tpu.memory_space<vmem>>, vector<1x8x4xbf16>
    %129 = vector.shape_cast %128 : vector<1x8x4xbf16> to vector<8x4xbf16>
    %cst_86 = arith.constant dense<0.000000e+00> : vector<8x384xf32>
    %130 = tpu.matmul %129, %117, %cst_86 {dimension_numbers = #tpu.dot_dimension_numbers<[1], [0], [0], [1], [0, 0, 1, 1], [], []>} : vector<8x4xbf16>, vector<4x384xbf16>, vector<8x384xf32> -> vector<8x384xf32>
    %131 = vector.broadcast %127 : vector<1x384xf32> to vector<8x384xf32>
    %132 = arith.mulf %130, %131 : vector<8x384xf32>
    %133 = arith.addf %116, %132 : vector<8x384xf32>
    %c0_87 = arith.constant 0 : index
    %c37 = arith.constant 37 : index
    %134 = vector.load %arg9[%c0_87, %c37] : memref<4x768xbf16, #tpu.memory_space<vmem>>, vector<4x384xbf16>
    %c0_88 = arith.constant 0 : index
    %c37_89 = arith.constant 37 : index
    %135 = vector.load %arg10[%c0_88, %c37_89] : memref<1x768xbf16, #tpu.memory_space<vmem>>, vector<1x384xbf16>
    %136 = arith.extf %135 : vector<1x384xbf16> to vector<1x384xf32>
    %137 = arith.subf %136, %13 : vector<1x384xf32>
    %138 = math.absf %137 : vector<1x384xf32>
    %cst_90 = arith.constant 0.000000e+00 : f32
    %cst_91 = arith.constant 1.000000e+00 : f32
    %139 = vector.broadcast %cst_90 : f32 to vector<1x384xf32>
    %140 = arith.maximumf %139, %138 : vector<1x384xf32>
    %141 = vector.broadcast %cst_91 : f32 to vector<1x384xf32>
    %142 = arith.minimumf %141, %140 : vector<1x384xf32>
    %cst_92 = arith.constant 1.000000e+00 : f32
    %143 = vector.broadcast %cst_92 : f32 to vector<1x384xf32>
    %144 = arith.subf %143, %142 : vector<1x384xf32>
    %c7 = arith.constant 7 : index
    %c0_93 = arith.constant 0 : index
    %c0_94 = arith.constant 0 : index
    %145 = vector.load %arg2[%c7, %c0_93, %c0_94] : memref<9x8x4xbf16, #tpu.memory_space<vmem>>, vector<1x8x4xbf16>
    %146 = vector.shape_cast %145 : vector<1x8x4xbf16> to vector<8x4xbf16>
    %cst_95 = arith.constant dense<0.000000e+00> : vector<8x384xf32>
    %147 = tpu.matmul %146, %134, %cst_95 {dimension_numbers = #tpu.dot_dimension_numbers<[1], [0], [0], [1], [0, 0, 1, 1], [], []>} : vector<8x4xbf16>, vector<4x384xbf16>, vector<8x384xf32> -> vector<8x384xf32>
    %148 = vector.broadcast %144 : vector<1x384xf32> to vector<8x384xf32>
    %149 = arith.mulf %147, %148 : vector<8x384xf32>
    %150 = arith.addf %133, %149 : vector<8x384xf32>
    %c0_96 = arith.constant 0 : index
    %c38 = arith.constant 38 : index
    %151 = vector.load %arg9[%c0_96, %c38] : memref<4x768xbf16, #tpu.memory_space<vmem>>, vector<4x384xbf16>
    %c0_97 = arith.constant 0 : index
    %c38_98 = arith.constant 38 : index
    %152 = vector.load %arg10[%c0_97, %c38_98] : memref<1x768xbf16, #tpu.memory_space<vmem>>, vector<1x384xbf16>
    %153 = arith.extf %152 : vector<1x384xbf16> to vector<1x384xf32>
    %154 = arith.subf %153, %13 : vector<1x384xf32>
    %155 = math.absf %154 : vector<1x384xf32>
    %cst_99 = arith.constant 0.000000e+00 : f32
    %cst_100 = arith.constant 1.000000e+00 : f32
    %156 = vector.broadcast %cst_99 : f32 to vector<1x384xf32>
    %157 = arith.maximumf %156, %155 : vector<1x384xf32>
    %158 = vector.broadcast %cst_100 : f32 to vector<1x384xf32>
    %159 = arith.minimumf %158, %157 : vector<1x384xf32>
    %cst_101 = arith.constant 1.000000e+00 : f32
    %160 = vector.broadcast %cst_101 : f32 to vector<1x384xf32>
    %161 = arith.subf %160, %159 : vector<1x384xf32>
    %c8 = arith.constant 8 : index
    %c0_102 = arith.constant 0 : index
    %c0_103 = arith.constant 0 : index
    %162 = vector.load %arg2[%c8, %c0_102, %c0_103] : memref<9x8x4xbf16, #tpu.memory_space<vmem>>, vector<1x8x4xbf16>
    %163 = vector.shape_cast %162 : vector<1x8x4xbf16> to vector<8x4xbf16>
    %cst_104 = arith.constant dense<0.000000e+00> : vector<8x384xf32>
    %164 = tpu.matmul %163, %151, %cst_104 {dimension_numbers = #tpu.dot_dimension_numbers<[1], [0], [0], [1], [0, 0, 1, 1], [], []>} : vector<8x4xbf16>, vector<4x384xbf16>, vector<8x384xf32> -> vector<8x384xf32>
    %165 = vector.broadcast %161 : vector<1x384xf32> to vector<8x384xf32>
    %166 = arith.mulf %164, %165 : vector<8x384xf32>
    %167 = arith.addf %150, %166 : vector<8x384xf32>
    %c0_105 = arith.constant 0 : index
    %c0_106 = arith.constant 0 : index
    %168 = vector.load %arg3[%c0_105, %c0_106] : memref<8x1xf32, #tpu.memory_space<vmem>>, vector<8x1xf32>
    %169 = vector.broadcast %168 : vector<8x1xf32> to vector<8x384xf32>
    %170 = arith.addf %167, %169 : vector<8x384xf32>
    %c0_107 = arith.constant 0 : index
    %c0_108 = arith.constant 0 : index
    %c0_109 = arith.constant 0 : index
    %171 = vector.load %arg8[%c0_107, %c0_108, %c0_109] : memref<1x8x384xf32, #tpu.memory_space<vmem>>, vector<1x8x384xf32>
    %172 = vector.shape_cast %171 : vector<1x8x384xf32> to vector<8x384xf32>
    %173 = vector.shape_cast %170 : vector<8x384xf32> to vector<1x8x384xf32>
    tpu.vector_store %arg8[%c0_107, %c0_108, %c0_109], %173 {strides = array<i32>} : memref<1x8x384xf32, #tpu.memory_space<vmem>>, vector<1x8x384xf32>,
    return
  }
  func.func @transform_0(%arg0: i32, %arg1: i32) -> (i32, i32, i32) {
    %c0_i32 = arith.constant 0 : i32
    %c0_i32_0 = arith.constant 0 : i32
    %c0_i32_1 = arith.constant 0 : i32
    %c0_i32_2 = arith.constant 0 : i32
    return %c0_i32, %c0_i32_0, %c0_i32_1 : i32, i32, i32
  }
  func.func @transform_1(%arg0: i32, %arg1: i32) -> (i32, i32) {
    %c0_i32 = arith.constant 0 : i32
    %c0_i32_0 = arith.constant 0 : i32
    %c0_i32_1 = arith.constant 0 : i32
    return %c0_i32, %c0_i32_0 : i32, i32
  }
  func.func @transform_2(%arg0: i32, %arg1: i32) -> (i32, i32, i32) {
    %c0_i32 = arith.constant 0 : i32
    %c0_i32_0 = arith.constant 0 : i32
    return %arg0, %c0_i32, %arg1 : i32, i32, i32
  }
  func.func @transform_3(%arg0: i32, %arg1: i32) -> (i32, i32, i32) {
    %c1_i32 = arith.constant 1 : i32
    %0 = arith.addi %arg1, %c1_i32 : i32
    %c0_i32 = arith.constant 0 : i32
    %c0_i32_0 = arith.constant 0 : i32
    return %arg0, %c0_i32, %0 : i32, i32, i32
  }
  func.func @transform_4(%arg0: i32, %arg1: i32) -> (i32, i32, i32) {
    %c0_i32 = arith.constant 0 : i32
    %c0_i32_0 = arith.constant 0 : i32
    return %arg0, %c0_i32, %arg1 : i32, i32, i32
  }
  func.func @transform_5(%arg0: i32, %arg1: i32) -> (i32, i32, i32) {
    %c1_i32 = arith.constant 1 : i32
    %0 = arith.addi %arg1, %c1_i32 : i32
    %c0_i32 = arith.constant 0 : i32
    %c0_i32_0 = arith.constant 0 : i32
    return %arg0, %c0_i32, %0 : i32, i32, i32
  }
  func.func @transform_6(%arg0: i32, %arg1: i32) -> (i32, i32, i32) {
    %c0_i32 = arith.constant 0 : i32
    %c0_i32_0 = arith.constant 0 : i32
    return %arg0, %c0_i32, %arg1 : i32, i32, i32
  }
}

</mosaic_0001>

<bundles_post_ra>
// kernel: tpu_custom_call.1
= control target key start
LH: loop header
LB: loop body
LE: loop exit
PB: predicated region body
PF: predicated region fallthrough
CT: control target
= control target key end

     0   :  { %11 = vsyncpa [#allocation5], 0  ;;  %s3171_s0 = inlined_call_operand.vmem [shape: bf16[9,8,4], index: 0, kind: input, shape index: {}]   ;;  %s3172_s1 = inlined_call_operand.vmem [shape: f32[8,1], index: 1, kind: input, shape index: {}]   ;;  %s3173_s2 = inlined_call_operand.vmem [shape: bf16[2,4,768], index: 2, kind: input, shape index: {}]   ;;  %s3174_s3 = inlined_call_operand.vmem [shape: bf16[2,4,768], index: 3, kind: input, shape index: {}]   ;;  %s3175_s4 = inlined_call_operand.vmem [shape: bf16[2,1,768], index: 4, kind: input, shape index: {}]   ;;  %s3176_s5 = inlined_call_operand.vmem [shape: bf16[2,1,768], index: 5, kind: input, shape index: {}]   ;;  %s3177_s6 = inlined_call_operand.hbm [shape: f32[2,8,384], index: 6, kind: output, shape index: {}]  }
   0x1   :  { %13 = vsyncpa [#allocation5 + $0x1], 0  ;;  %s2667_s21 = smov 0   ;;  %s2669_s22 = smov 0  }
   0x2   :  { %s2671_s23 = smov 0   ;;  %s2673_s24 = smov 0  }
   0x3   :  { %s2675_s25 = smov 0   ;;  %s2677_s26 = smov 0  }
   0x4 LB: > { %s2335_s27 = sadd.s32 4294967295, %s2612_s26   ;;  %s2336_s28 = sadd.s32 4294967294, %s2612_s26   ;;  %s2612_s26 = sphi %s2677_s26, %s19_s26   ;;  %s2608_s25 = sphi %s2675_s25, %s3190_s25   ;;  %s2604_s24 = sphi %s2673_s24, %s3189_s24   ;;  %s2600_s23 = sphi %s2671_s23, %s3188_s23   ;;  %s2596_s22 = sphi %s2669_s22, %s3187_s22   ;;  %s2592_s21 = sphi %s2667_s21, %s3186_s21  }
   0x5   : > { %s31_s29 = sadd.s32 1, %s2608_s25  ;;  %s198_s30 = sadd.s32 1, %s2600_s23 }
   0x6   : > { %p33_p0 = scmp.ge.s32.totalorder %s31_s29, 2  ;;  %p208_p1 = scmp.ne.s32.totalorder %s2600_s23, %s2596_s22 }
   0x7   : > { %p209_p2 = scmp.eq.s32.totalorder %s2335_s27, 1  ;;  %p214_p3 = scmp.ne.s32.totalorder %s2596_s22, %s2592_s21 }
   0x8   : > { %s3192_s29 = smov (%p33_p0, %s31_s29), 0  ;;  %p215_p5 = scmp.eq.s32.totalorder %s2336_s28, 1 }
   0x9   : > { %p2707_p4 = por %p209_p2, %p208_p1  ;;  %s193_s8 = ssub.s32 %s2608_s25, %s3192_s29 }
   0xa   : > { %p2339_p6 = scmp.ge.s32.totalorder %s2612_s26, 1  ;;  %p196_p7 = scmp.eq.s32.totalorder %s193_s8, 0 }
   0xb   : > { %p2714_p8 = por %p215_p5, %p214_p3  ;;  %p293_p9 = scmp.lt.s32.totalorder %s2612_s26, 3 }
   0xc   : > { %s2720_s10 = scalar_select %p196_p7, %s2600_s23, %s198_s30  }
   0xd   : > { %p294_p10 = pnand %p2339_p6, %p293_p9 }
   0xe   : > { %p355_p11 = scmp.lt.s32.totalorder (!%p294_p10), %s2604_s24, 1  ;;  %vm403_vm0 = vcmask (!%p294_p10), 1040384   ;;  %vm404_vm1 = vsmask.f32 (!%p294_p10), 256  ;;  %vm406_vm2 = vcmask (!%p294_p10), 1041409   ;;  %vm410_vm5 = vcmask (!%p294_p10), 1042434  }
   0xf   : > { %297 = sbr.rel (%p294_p10) target bundleno = 453 (0x1c5), region = 44  ;;  %vm2723_vm3 = vmand (!%p294_p10), %vm403_vm0, %vm404_vm1  ;;  %vm407_vm4 = vsmask.f32 (!%p294_p10), 1280  ;;  %vm411_vm6 = vsmask.f32 (!%p294_p10), 2304  ;;  %v2614_v2 = vmov (!%p294_p10), 0.0   ;;  %v444_v6 = vlaneseq (!%p294_p10) }
  0x10   : > { %vm2728_vm7 = vmand (!%p294_p10), %vm406_vm2, %vm407_vm4  ;;  %2400 = vmatprep.subr.bf16.mxu1 (!%p294_p10), %v2614_v2  ;;  %v2615_v3 = vmov (!%p294_p10), 0   ;;  %v2616_v4 = vmov (!%p294_p10), 1983009808   ;;  %vm2617_vm10 = vmmov (!%p294_p10), 0   ;;  %v414_v8 = vld [vmem:[#allocation3] sm:$0x7] (!%p294_p10) }
  0x11   : > { %vm409_vm8 = vmor (!%p294_p10), %vm2728_vm7, %vm2723_vm3  ;;  %502 = vmatprep.mubr.bf16.mxu0 (!%p294_p10), %v2615_v3  ;;  %v442_v5 = vunpack.c.l.s4 (!%p294_p10), %v2616_v4  ;;  %2402 = vmatprep.mubr.msk.bf16.mxu1 (!%p294_p10), %vm2617_vm10, %v2614_v2  ;;  %v418_v10 = vld [vmem:[#allocation3 + $0x3] sm:$0x7] (!%p294_p10)  ;;  %v2764_v15 = vshrl.u32 (!%p294_p10), %v444_v6, 7  ;;  %vm460_vm12 = vcmask (!%p294_p10), 1041408   ;;  %v438_v32 = vld [vmem:[%s3171_s0] sm:$0xf] (!%p294_p10) }
  0x12   : > { %vm412_vm9 = vmand (!%p294_p10), %vm410_vm5, %vm411_vm6  ;;  %2531 = vset.pattern.permute.xlu0 (!%p294_p10), %v2615_v3  ;;  %vm456_vm13 = vcmask (!%p294_p10), 31744   ;;  %s2620_s18 = smov (!%p294_p10), 110   ;;  %s2621_s19 = smov (!%p294_p10), 109   ;;  %v2182_v52 = vld [vmem:[%s3172_s1] sm:$0xff] (!%p294_p10)  ;;  %vm627_vm14 = vcmask (!%p294_p10), 1039360   ;;  %vm828_vm15 = vcmask (!%p294_p10), 1031168  }
  0x13   : > { %vm2749_vm11 = vmor (!%p294_p10), %vm412_vm9, %vm409_vm8  ;;  %v443_v14 = vunpack.c.0.s8 (!%p294_p10), %v442_v5  ;;  %s2623_s27 = smov (!%p294_p10), 92   ;;  %s2624_s28 = smov (!%p294_p10), 91   ;;  %v2815_v39 = vsub.s32 (!%p294_p10), 0, %v2764_v15  ;;  %v2819_v41 = vsub.s32 (!%p294_p10), 2, %v2764_v15  ;;  %v2823_v43 = vsub.s32 (!%p294_p10), 4, %v2764_v15 }
  0x14   : > { %v2827_v45 = vsub.s32 (!%p294_p10), 6, %v2764_v15  ;;  %s2630_s15 = smov (!%p294_p10), 19   ;;  %v2345_v61 = vld [vmem:[%s3171_s0 + $0x4] sm:$0xf] (!%p294_p10)  ;;  %vm591_vm0 = vcmask (!%p294_p10), 900096   ;;  %vm430_vm1 = vcmask (!%p294_p10), 891904  }
  0x15   : > { %v446_v18 = vsub.s32 (!%p294_p10), %v443_v14, %v2764_v15  ;;  %vm1420_vm2 = vcmask (!%p294_p10), 883712   ;;  %vm1621_vm3 = vcmask (!%p294_p10), 752640   ;;  %vm1822_vm4 = vcmask (!%p294_p10), 744448  }
  0x16   : > { %s356_s11 = scalar_select %p355_p11, %s2604_s24, 1  ;;  %vm2023_vm5 = vcmask 736256   ;;  %vm792_vm6 = vcmask 908288   ;;  %vm1384_vm7 = vcmask 7168   ;;  %vm1585_vm8 = vcmask 138240  }
  0x17   : > { %vm1786_vm9 = vcmask 146432  }
  0x18   : > { %s2455_s12 = smul.u32 12, %s356_s11 }
  0x19   : > { %s2456_s13 = smul.u32 6, %s356_s11  ;;  %s2627_s11 = smov 1  }
  0x1a   : > { %s362_s16 = scalar_lea.vmem %s3173_s2, %s2455_s12  ;;  %s2381_s17 = sadd.s32 6, %s2455_s12 }
  0x1b   : > { %s373_s20 = scalar_lea.vmem %s3174_s3, %s2381_s17  ;;  %s383_s30 = scalar_lea.vmem %s3175_s4, %s2456_s13  ;;  %v398_v9 = vld [vmem:[%s362_s16] sm:$0x3f] }
  0x1c   : > { %s392_s8 = sadd.s32 3, %s2456_s13  ;;  %399 = vst [vmem:[#allocation2] sm:$0x3f] %v398_v9  ;;  %v400_v11 = vld [vmem:[%s373_s20] sm:$0x3f]  ;;  %s2618_s13 = smov 127  }
  0x1d   : > { %v402_v12 = vld [vmem:[%s383_s30] sm:$0x7]  ;;  %s393_s14 = scalar_lea.vmem %s3176_s5, %s392_s8  ;;  %401 = vst [vmem:[#allocation2 + $0x6] sm:$0x3f] %v400_v11  ;;  %s2619_s17 = smov 126  }
  0x1e   : > { %v415_v13 = vsel %vm2749_vm11, %v402_v12, %v414_v8  ;;  %v417_v16 = vld [vmem:[%s393_s14] sm:$0x7]  ;;  %s2622_s20 = smov 108   ;;  %s2625_s30 = smov 90   ;;  %v2349_v9 = vld [vmem:[%s3171_s0 + $0x8] sm:$0xf] }
  0x1f   : > { %416 = vst [vmem:[#allocation3] sm:$0x7] %v415_v13  ;;  %v419_v17 = vsel %vm2749_vm11, %v417_v16, %v418_v10  ;;  %s2626_s8 = smov 111   ;;  %s2628_s12 = smov 17  }
  0x20   : > { %420 = vst [vmem:[#allocation3 + $0x3] sm:$0x7] %v419_v17  ;;  %s2629_s14 = smov 18  }
  0x23   : > { %v423_v19 = vld [vmem:[#allocation2] sm:$0x3f] }
  0x24   : > { %v585_v20 = vld [vmem:[#allocation2] sm:$0xff]  ;;  %v447_v21 = vrot.slane %v423_v19, %v446_v18  ;;  %v440_v22 = vcombine.high %v423_v19, %v423_v19  ;;  %v2353_v19 = vld [vmem:[%s3171_s0 + $0xc] sm:$0xf] }
  0x25   : > { %v609_v23 = vrot.slane %v585_v20, %v446_v18  ;;  %v602_v24 = vcombine.high %v585_v20, %v585_v20 }
  0x26   : > { %v455_v25 = vcombine.high %v447_v21, %v447_v21  ;;  %v462_v26 = vsel %vm460_vm12, %v447_v21, 0  ;;  %v454_v27 = vrot.slane %v440_v22, %v446_v18 }
  0x27   : > { %619 = vrot.lane.b32.xlu0 %v609_v23, %s2618_s13  ;;  %v617_v28 = vcombine.high %v609_v23, %v609_v23  ;;  %v616_v29 = vrot.slane %v602_v24, %v446_v18  ;;  %v421_v33 = vld [vmem:[#allocation3] sm:$0xf] }
  0x28   : > { %2342 = vmatprep.subr.msk.bf16.mxu0 %vm460_vm12, %v455_v25  ;;  %v468_v30 = vsel %vm460_vm12, %v454_v27, 0  ;;  %v422_v34 = vunpack.c.l.bf16 %v421_v33 }
  0x29   : > { %623 = vrot.lane.b32.xlu1 %v616_v29, %s2618_s13  ;;  %v618_v31 = vcombine.high %v616_v29, %v616_v29  ;;  %471 = vmatpush1.bf16.msra.mxu0 %v462_v26 }
  0x2a   : > { %2401 = vmatpush3.bf16.msra.mxu1 %v468_v30  ;;  %v1187_v35 = vsub.f32 %v422_v34, %v422_v34 }
  0x2b   : > { %621 = vrot.lane.b32.xlu0 %v617_v28, %s2618_s13  ;;  %2406 = vmatprep.subr.bf16.mxu1 %v2614_v2 }
  0x2c   : > { %2343 = vmatmul.mubr.msk.bf16.vlgmr.msra.gmra.mrb[0].mxu0 %vm456_vm13, %v438_v32  ;;  %v1188_v36 = vand.u32 2147483647, %v1187_v35 }
  0x2d   : > { %625 = vrot.lane.b32.xlu1 %v618_v31, %s2618_s13  ;;  %2403 = vmatmul.mubr.msk.bf16.vlgmr.msra.gmra.mrb[0].mxu1 %vm456_vm13, %v438_v32 }
  0x2e   : > { %675 = vmatprep.mubr.bf16.mxu0 %v2615_v3  ;;  %2408 = vmatprep.mubr.msk.bf16.mxu1 %vm2617_vm10, %v2614_v2  ;;  %v1189_v37 = vmax.f32 %v1188_v36, 0.0 }
  0x2f   : > { %820 = vrot.lane.b32.xlu0 %v609_v23, %s2619_s17 }
  0x30   : > { %v1190_v38 = vmin.f32 %v1189_v37, 1.0 }
  0x31   : > { %822 = vrot.lane.b32.xlu1 %v617_v28, %s2619_s17 }
  0x32   : > { %v1191_v40 = vsub.f32 1.0, %v1190_v38 }
  0x33   : > { %824 = vrot.lane.b32.xlu0 %v616_v29, %s2619_s17 }
  0x34   : > { %v1321_v42 = vrot.slane %v1191_v40, %v2815_v39  ;;  %v1325_v44 = vrot.slane %v1191_v40, %v2819_v41  ;;  %v1329_v47 = vrot.slane %v1191_v40, %v2823_v43  ;;  %v1333_v49 = vrot.slane %v1191_v40, %v2827_v45  ;;  %v2361_v40 = vld [vmem:[%s3171_s0 + $0x14] sm:$0xf] }
  0x35   : > { %826 = vrot.lane.b32.xlu1 %v618_v31, %s2619_s17 }
  0x36   : > { %v1341_v46 = vrot.slane %v1321_v42, %v2815_v39  ;;  %v1345_v48 = vrot.slane %v1325_v44, %v2815_v39  ;;  %v1349_v50 = vrot.slane %v1329_v47, %v2815_v39  ;;  %v1353_v51 = vrot.slane %v1333_v49, %v2815_v39 }
  0x37   : > { %1020 = vrot.lane.b32.xlu0 %v609_v23, %s2620_s18 }
  0x39   : > { %1022 = vrot.lane.b32.xlu1 %v617_v28, %s2620_s18 }
  0x3b   : > { %1024 = vrot.lane.b32.xlu0 %v616_v29, %s2620_s18 }
  0x3d   : > { %1026 = vrot.lane.b32.xlu1 %v618_v31, %s2620_s18 }
  0x3f   : > { %1212 = vrot.lane.b32.xlu0 %v609_v23, %s2621_s19 }
  0x41   : > { %1214 = vrot.lane.b32.xlu1 %v617_v28, %s2621_s19 }
  0x43   : > { %1216 = vrot.lane.b32.xlu0 %v616_v29, %s2621_s19 }
  0x45   : > { %1218 = vrot.lane.b32.xlu1 %v618_v31, %s2621_s19 }
  0x47   : > { %1412 = vrot.lane.b32.xlu0 %v609_v23, %s2622_s20 }
  0x49   : > { %1414 = vrot.lane.b32.xlu1 %v617_v28, %s2622_s20 }
  0x4b   : > { %1416 = vrot.lane.b32.xlu0 %v616_v29, %s2622_s20 }
  0x4d   : > { %1418 = vrot.lane.b32.xlu1 %v618_v31, %s2622_s20 }
  0x4f   : > { %1613 = vrot.lane.b32.xlu0 %v609_v23, %s2623_s27 }
  0x51   : > { %1615 = vrot.lane.b32.xlu1 %v617_v28, %s2623_s27 }
  0x53   : > { %1617 = vrot.lane.b32.xlu0 %v616_v29, %s2623_s27 }
  0x55   : > { %1619 = vrot.lane.b32.xlu1 %v618_v31, %s2623_s27 }
  0x57   : > { %1814 = vrot.lane.b32.xlu0 %v609_v23, %s2624_s28 }
  0x59   : > { %1816 = vrot.lane.b32.xlu1 %v617_v28, %s2624_s28 }
  0x5b   : > { %1818 = vrot.lane.b32.xlu0 %v616_v29, %s2624_s28 }
  0x5d   : > { %1820 = vrot.lane.b32.xlu1 %v618_v31, %s2624_s28 }
  0x5f   : > { %2015 = vrot.lane.b32.xlu0 %v609_v23, %s2625_s30 }
  0x61   : > { %2017 = vrot.lane.b32.xlu1 %v617_v28, %s2625_s30 }
  0x63   : > { %2019 = vrot.lane.b32.xlu0 %v616_v29, %s2625_s30  ;;  %v2357_v29 = vld [vmem:[%s3171_s0 + $0x10] sm:$0xf] }
  0x65   : > { %2021 = vrot.lane.b32.xlu1 %v618_v31, %s2625_s30 }
  0x67   : > { %588 = vrot.lane.b32.xlu0 %v422_v34, %s2620_s18 }
  0x69   : > { %789 = vrot.lane.b32.xlu1 %v422_v34, %s2626_s8 }
  0x6b   : > { %990 = vrot.lane.b32.xlu0 %v422_v34, %s2618_s13 }
  0x6d   : > { %1381 = vrot.lane.b32.xlu1 %v422_v34, %s2627_s11 }
  0x6f   : > { %1582 = vrot.lane.b32.xlu0 %v422_v34, %s2628_s12 }
  0x71   : > { %1783 = vrot.lane.b32.xlu1 %v422_v34, %s2629_s14 }
  0x73   : > { %1984 = vrot.lane.b32.xlu0 %v422_v34, %s2630_s15  ;;  %s2631_s15 = smov [#allocation4]  }
  0x74   : > { %s2538_s16 = sshll.u32 %s2631_s15, 4  ;;  %s2539_s16 = int_to_ptr.vmem [resolvable:$false] %s2538_s16 }
  0x75   : > { %427 = vrot.lane.b32.xlu1 %v422_v34, %s2621_s19  ;;  %s2540_s8 = scalar_lea.vmem %s2539_s16, 768 }
  0x77   : > { %1358 = vrot.lane.b32.xlu0 %v1341_v46, %s2621_s19 }
  0x79   : > { %1360 = vrot.lane.b32.xlu1 %v1345_v48, %s2621_s19 }
  0x7b   : > { %1362 = vrot.lane.b32.xlu0 %v1349_v50, %s2621_s19 }
  0x7d   : > { %1364 = vrot.lane.b32.xlu1 %v1353_v51, %s2621_s19 }
  0x7f   : > { %2185 = vperm.xlu0 %2531, %v2182_v52  }
  0x99   : > { %v620_v53 = vpop.permute.xlu0 %619 }
  0x9b   : > { %v624_v54 = vpop.permute.xlu1 %623 }
  0x9d   : > { %v622_v55 = vpop.permute.xlu0 %621 }
  0x9e   : > { %v628_v56 = vsel %vm627_vm14, %v620_v53, %v622_v55  ;;  %v629_v57 = vsel %vm627_vm14, %v622_v55, %v624_v54  ;;  %v2365_v53 = vld [vmem:[%s3171_s0 + $0x18] sm:$0xf] }
  0x9f   : > { %v635_v58 = vsel %vm460_vm12, %v628_v56, 0  ;;  %v626_v59 = vpop.permute.xlu1 %625  ;;  %2346 = vmatprep.subr.msk.bf16.mxu0 %vm460_vm12, %v629_v57 }
  0xa0   : > { %v630_v60 = vsel %vm627_vm14, %v624_v54, %v626_v59  ;;  %644 = vmatpush1.bf16.msra.mxu0 %v635_v58 }
  0xa1   : > { %v641_v62 = vsel %vm460_vm12, %v630_v60, 0  ;;  %v821_v63 = vpop.permute.xlu0 %820 }
  0xa2   : > { %2407 = vmatpush3.bf16.msra.mxu1 %v641_v62 }
  0xa3   : > { %v823_v0 = vpop.permute.xlu1 %822  ;;  %2347 = vmatmul.mubr.msk.bf16.vlgmr.msra.gmra.mrb[4].mxu0 %vm456_vm13, %v2345_v61  ;;  %2412 = vmatprep.subr.bf16.mxu1 %v2614_v2 }
  0xa4   : > { %v829_v1 = vsel %vm828_vm15, %v821_v63, %v823_v0  ;;  %876 = vmatprep.mubr.bf16.mxu0 %v2615_v3  ;;  %v2369_v63 = vld [vmem:[%s3171_s0 + $0x1c] sm:$0xf] }
  0xa5   : > { %v825_v4 = vpop.permute.xlu0 %824  ;;  %2409 = vmatmul.mubr.msk.bf16.vlgmr.msra.gmra.mrb[4].mxu1 %vm456_vm13, %v2345_v61  ;;  %v836_v6 = vsel %vm460_vm12, %v829_v1, 0 }
  0xa6   : > { %v830_v5 = vsel %vm828_vm15, %v823_v0, %v825_v4  ;;  %2414 = vmatprep.mubr.msk.bf16.mxu1 %vm2617_vm10, %v2614_v2 }
  0xa7   : > { %v827_v7 = vpop.permute.xlu1 %826  ;;  %2350 = vmatprep.subr.msk.bf16.mxu0 %vm460_vm12, %v830_v5 }
  0xa8   : > { %v831_v8 = vsel %vm828_vm15, %v825_v4, %v827_v7  ;;  %845 = vmatpush1.bf16.msra.mxu0 %v836_v6 }
  0xa9   : > { %v842_v10 = vsel %vm460_vm12, %v831_v8, 0  ;;  %v1021_v11 = vpop.permute.xlu0 %1020  ;;  %v586_v8 = vld [vmem:[#allocation3] sm:$0xf] }
  0xaa   : > { %2413 = vmatpush3.bf16.msra.mxu1 %v842_v10 }
  0xab   : > { %v1023_v12 = vpop.permute.xlu1 %1022  ;;  %2351 = vmatmul.mubr.msk.bf16.vlgmr.msra.gmra.mrb[8].mxu0 %vm456_vm13, %v2349_v9  ;;  %2418 = vmatprep.subr.bf16.mxu1 %v2614_v2 }
  0xac   : > { %v1029_v13 = vsel %vm591_vm0, %v1021_v11, %v1023_v12  ;;  %1076 = vmatprep.mubr.bf16.mxu0 %v2615_v3 }
  0xad   : > { %v1025_v14 = vpop.permute.xlu0 %1024  ;;  %2415 = vmatmul.mubr.msk.bf16.vlgmr.msra.gmra.mrb[8].mxu1 %vm456_vm13, %v2349_v9  ;;  %v1036_v16 = vsel %vm460_vm12, %v1029_v13, 0 }
  0xae   : > { %v1030_v15 = vsel %vm591_vm0, %v1023_v12, %v1025_v14  ;;  %2420 = vmatprep.mubr.msk.bf16.mxu1 %vm2617_vm10, %v2614_v2  ;;  %v787_v12 = vld [vmem:[#allocation3] sm:$0xf] }
  0xaf   : > { %v1027_v17 = vpop.permute.xlu1 %1026  ;;  %2354 = vmatprep.subr.msk.bf16.mxu0 %vm460_vm12, %v1030_v15 }
  0xb0   : > { %v1031_v18 = vsel %vm591_vm0, %v1025_v14, %v1027_v17  ;;  %1045 = vmatpush1.bf16.msra.mxu0 %v1036_v16  ;;  %v587_v14 = vunpack.c.l.bf16 %v586_v8  ;;  %v988_v16 = vld [vmem:[#allocation3] sm:$0xf]  ;;  %v788_v17 = vunpack.c.l.bf16 %v787_v12 }
  0xb1   : > { %v1042_v20 = vsel %vm460_vm12, %v1031_v18, 0  ;;  %v1213_v21 = vpop.permute.xlu0 %1212 }
  0xb2   : > { %2419 = vmatpush3.bf16.msra.mxu1 %v1042_v20 }
  0xb3   : > { %v1215_v22 = vpop.permute.xlu1 %1214  ;;  %2355 = vmatmul.mubr.msk.bf16.vlgmr.msra.gmra.mrb[12].mxu0 %vm456_vm13, %v2353_v19  ;;  %2424 = vmatprep.subr.bf16.mxu1 %v2614_v2 }
  0xb4   : > { %v1221_v23 = vsel %vm430_vm1, %v1213_v21, %v1215_v22  ;;  %1268 = vmatprep.mubr.bf16.mxu0 %v2615_v3 }
  0xb5   : > { %v1217_v24 = vpop.permute.xlu0 %1216  ;;  %2421 = vmatmul.mubr.msk.bf16.vlgmr.msra.gmra.mrb[12].mxu1 %vm456_vm13, %v2353_v19  ;;  %v1228_v26 = vsel %vm460_vm12, %v1221_v23, 0 }
  0xb6   : > { %v1222_v25 = vsel %vm430_vm1, %v1215_v22, %v1217_v24  ;;  %2426 = vmatprep.mubr.msk.bf16.mxu1 %vm2617_vm10, %v2614_v2  ;;  %v989_v22 = vunpack.c.l.bf16 %v988_v16 }
  0xb7   : > { %v1219_v27 = vpop.permute.xlu1 %1218  ;;  %2358 = vmatprep.subr.msk.bf16.mxu0 %vm460_vm12, %v1222_v25 }
  0xb8   : > { %v1223_v28 = vsel %vm430_vm1, %v1217_v24, %v1219_v27  ;;  %1237 = vmatpush1.bf16.msra.mxu0 %v1228_v26 }
  0xb9   : > { %v1234_v30 = vsel %vm460_vm12, %v1223_v28, 0  ;;  %v1413_v31 = vpop.permute.xlu0 %1412  ;;  %v1379_v28 = vld [vmem:[#allocation3] sm:$0xf] }
  0xba   : > { %2425 = vmatpush3.bf16.msra.mxu1 %v1234_v30 }
  0xbb   : > { %v1415_v32 = vpop.permute.xlu1 %1414  ;;  %2359 = vmatmul.mubr.msk.bf16.vlgmr.msra.gmra.mrb[16].mxu0 %vm456_vm13, %v2357_v29  ;;  %2430 = vmatprep.subr.bf16.mxu1 %v2614_v2 }
  0xbc   : > { %v1421_v33 = vsel %vm1420_vm2, %v1413_v31, %v1415_v32  ;;  %1468 = vmatprep.mubr.bf16.mxu0 %v2615_v3 }
  0xbd   : > { %v1417_v34 = vpop.permute.xlu0 %1416  ;;  %2427 = vmatmul.mubr.msk.bf16.vlgmr.msra.gmra.mrb[16].mxu1 %vm456_vm13, %v2357_v29  ;;  %v1428_v36 = vsel %vm460_vm12, %v1421_v33, 0 }
  0xbe   : > { %v1422_v35 = vsel %vm1420_vm2, %v1415_v32, %v1417_v34  ;;  %2432 = vmatprep.mubr.msk.bf16.mxu1 %vm2617_vm10, %v2614_v2 }
  0xbf   : > { %v1419_v37 = vpop.permute.xlu1 %1418  ;;  %2362 = vmatprep.subr.msk.bf16.mxu0 %vm460_vm12, %v1422_v35  ;;  %v1380_v35 = vunpack.c.l.bf16 %v1379_v28  ;;  %v1982_v28 = vld [vmem:[#allocation3] sm:$0xf] }
  0xc0   : > { %v1423_v38 = vsel %vm1420_vm2, %v1417_v34, %v1419_v37  ;;  %1437 = vmatpush1.bf16.msra.mxu0 %v1428_v36 }
  0xc1   : > { %v1434_v42 = vsel %vm460_vm12, %v1423_v38, 0  ;;  %v1614_v44 = vpop.permute.xlu0 %1613 }
  0xc2   : > { %2431 = vmatpush3.bf16.msra.mxu1 %v1434_v42 }
  0xc3   : > { %v1616_v46 = vpop.permute.xlu1 %1615  ;;  %2363 = vmatmul.mubr.msk.bf16.vlgmr.msra.gmra.mrb[20].mxu0 %vm456_vm13, %v2361_v40  ;;  %2436 = vmatprep.subr.bf16.mxu1 %v2614_v2 }
  0xc4   : > { %v1622_v47 = vsel %vm1621_vm3, %v1614_v44, %v1616_v46  ;;  %1669 = vmatprep.mubr.bf16.mxu0 %v2615_v3 }
  0xc5   : > { %v1618_v48 = vpop.permute.xlu0 %1617  ;;  %2433 = vmatmul.mubr.msk.bf16.vlgmr.msra.gmra.mrb[20].mxu1 %vm456_vm13, %v2361_v40  ;;  %v1629_v50 = vsel %vm460_vm12, %v1622_v47, 0 }
  0xc6   : > { %v1623_v49 = vsel %vm1621_vm3, %v1616_v46, %v1618_v48  ;;  %2438 = vmatprep.mubr.msk.bf16.mxu1 %vm2617_vm10, %v2614_v2 }
  0xc7   : > { %v1620_v51 = vpop.permute.xlu1 %1619  ;;  %2366 = vmatprep.subr.msk.bf16.mxu0 %vm460_vm12, %v1623_v49  ;;  %v1580_v49 = vld [vmem:[#allocation3] sm:$0xf] }
  0xc8   : > { %v1624_v52 = vsel %vm1621_vm3, %v1618_v48, %v1620_v51  ;;  %1638 = vmatpush1.bf16.msra.mxu0 %v1629_v50 }
  0xc9   : > { %v1635_v54 = vsel %vm460_vm12, %v1624_v52, 0  ;;  %v1815_v55 = vpop.permute.xlu0 %1814 }
  0xca   : > { %2437 = vmatpush3.bf16.msra.mxu1 %v1635_v54 }
  0xcb   : > { %v1817_v56 = vpop.permute.xlu1 %1816  ;;  %2367 = vmatmul.mubr.msk.bf16.vlgmr.msra.gmra.mrb[24].mxu0 %vm456_vm13, %v2365_v53  ;;  %2442 = vmatprep.subr.bf16.mxu1 %v2614_v2 }
  0xcc   : > { %v1823_v57 = vsel %vm1822_vm4, %v1815_v55, %v1817_v56  ;;  %1870 = vmatprep.mubr.bf16.mxu0 %v2615_v3 }
  0xcd   : > { %v1819_v58 = vpop.permute.xlu0 %1818  ;;  %2439 = vmatmul.mubr.msk.bf16.vlgmr.msra.gmra.mrb[24].mxu1 %vm456_vm13, %v2365_v53  ;;  %v1830_v60 = vsel %vm460_vm12, %v1823_v57, 0 }
  0xce   : > { %v1824_v59 = vsel %vm1822_vm4, %v1817_v56, %v1819_v58  ;;  %2444 = vmatprep.mubr.msk.bf16.mxu1 %vm2617_vm10, %v2614_v2 }
  0xcf   : > { %v1821_v61 = vpop.permute.xlu1 %1820  ;;  %2370 = vmatprep.subr.msk.bf16.mxu0 %vm460_vm12, %v1824_v59 }
  0xd0   : > { %v1825_v62 = vsel %vm1822_vm4, %v1819_v58, %v1821_v61  ;;  %1839 = vmatpush1.bf16.msra.mxu0 %v1830_v60  ;;  %v1581_v58 = vunpack.c.l.bf16 %v1580_v49 }
  0xd1   : > { %v1836_v0 = vsel %vm460_vm12, %v1825_v62, 0  ;;  %v2016_v1 = vpop.permute.xlu0 %2015 }
  0xd2   : > { %2443 = vmatpush3.bf16.msra.mxu1 %v1836_v0 }
  0xd3   : > { %v2018_v4 = vpop.permute.xlu1 %2017  ;;  %2371 = vmatmul.mubr.msk.bf16.vlgmr.msra.gmra.mrb[28].mxu0 %vm456_vm13, %v2369_v63  ;;  %2448 = vmatprep.subr.bf16.mxu1 %v2614_v2 }
  0xd4   : > { %v2024_v5 = vsel %vm2023_vm5, %v2016_v1, %v2018_v4  ;;  %2071 = vmatprep.mubr.bf16.mxu0 %v2615_v3  ;;  %v2373_v3 = vld [vmem:[%s3171_s0 + $0x20] sm:$0xf] }
  0xd5   : > { %v2020_v6 = vpop.permute.xlu0 %2019  ;;  %2445 = vmatmul.mubr.msk.bf16.vlgmr.msra.gmra.mrb[28].mxu1 %vm456_vm13, %v2369_v63  ;;  %v2031_v9 = vsel %vm460_vm12, %v2024_v5, 0 }
  0xd6   : > { %v2025_v7 = vsel %vm2023_vm5, %v2018_v4, %v2020_v6  ;;  %2450 = vmatprep.mubr.msk.bf16.mxu1 %vm2617_vm10, %v2614_v2  ;;  %vm1987_vm10 = vcmask 154624  }
  0xd7   : > { %v2022_v10 = vpop.permute.xlu1 %2021  ;;  %2374 = vmatprep.subr.msk.bf16.mxu0 %vm460_vm12, %v2025_v7 }
  0xd8   : > { %v2026_v11 = vsel %vm2023_vm5, %v2020_v6, %v2022_v10  ;;  %2040 = vmatpush1.bf16.msra.mxu0 %v2031_v9 }
  0xd9   : > { %v2037_v13 = vsel %vm460_vm12, %v2026_v11, 0  ;;  %v589_v15 = vpop.permute.xlu0 %588 }
  0xda   : > { %2449 = vmatpush3.bf16.msra.mxu1 %v2037_v13  ;;  %v590_v2 = vrot.slane %v589_v15, 2 }
  0xdb   : > { %2375 = vmatmul.mubr.msk.bf16.vlgmr.msra.gmra.mrb[32].mxu0 %vm456_vm13, %v2373_v3  ;;  %v790_v18 = vpop.permute.xlu1 %789 }
  0xdc   : > { %v592_v19 = vsel %vm591_vm0, %v589_v15, %v590_v2  ;;  %v791_v20 = vrot.slane %v790_v18, 2 }
  0xdd   : > { %2451 = vmatmul.mubr.msk.bf16.vlgmr.msra.gmra.mrb[32].mxu1 %vm456_vm13, %v2373_v3  ;;  %v594_v21 = vsub.f32 %v587_v14, %v592_v19  ;;  %v991_v23 = vpop.permute.xlu0 %990  ;;  %v1781_v3 = vld [vmem:[#allocation3] sm:$0xf] }
  0xde   : > { %v793_v24 = vsel %vm792_vm6, %v790_v18, %v791_v20  ;;  %v992_v25 = vrot.slane %v991_v23, 2  ;;  %v1782_v18 = vunpack.c.l.bf16 %v1781_v3 }
  0xdf   : > { %v595_v26 = vand.u32 2147483647, %v594_v21  ;;  %v795_v27 = vsub.f32 %v788_v17, %v793_v24  ;;  %v1382_v29 = vpop.permute.xlu1 %1381 }
  0xe0   : > { %v993_v30 = vsel %vm627_vm14, %v991_v23, %v992_v25  ;;  %v1383_v31 = vrot.slane %v1382_v29, 6 }
  0xe1   : > { %v596_v32 = vmax.f32 %v595_v26, 0.0  ;;  %v796_v33 = vand.u32 2147483647, %v795_v27  ;;  %v995_v34 = vsub.f32 %v989_v22, %v993_v30  ;;  %v1583_v42 = vpop.permute.xlu0 %1582 }
  0xe2   : > { %v1385_v40 = vsel %vm1384_vm7, %v1383_v31, %v1382_v29  ;;  %v1584_v50 = vrot.slane %v1583_v42, 6 }
  0xe3   : > { %v597_v36 = vmin.f32 %v596_v32, 1.0  ;;  %v797_v37 = vmax.f32 %v796_v33, 0.0  ;;  %v996_v38 = vand.u32 2147483647, %v995_v34  ;;  %v1387_v48 = vsub.f32 %v1380_v35, %v1385_v40  ;;  %v1784_v4 = vpop.permute.xlu1 %1783 }
  0xe4   : > { %v1586_v62 = vsel %vm1585_vm8, %v1584_v50, %v1583_v42  ;;  %v1785_v12 = vrot.slane %v1784_v4, 6  ;;  %v1983_v32 = vunpack.c.l.bf16 %v1982_v28 }
  0xe5   : > { %v598_v44 = vsub.f32 1.0, %v597_v36  ;;  %v798_v46 = vmin.f32 %v797_v37, 1.0  ;;  %v997_v47 = vmax.f32 %v996_v38, 0.0  ;;  %v1388_v60 = vand.u32 2147483647, %v1387_v48  ;;  %v1985_v20 = vpop.permute.xlu0 %1984 }
  0xe6   : > { %v1588_v8 = vsub.f32 %v1581_v58, %v1586_v62  ;;  %v1787_v19 = vsel %vm1786_vm9, %v1785_v12, %v1784_v4  ;;  %v1986_v29 = vrot.slane %v1985_v20, 6 }
  0xe7   : > { %v799_v51 = vsub.f32 1.0, %v798_v46  ;;  %v728_v52 = vrot.slane %v598_v44, %v2815_v39  ;;  %v732_v53 = vrot.slane %v598_v44, %v2819_v41  ;;  %v736_v54 = vrot.slane %v598_v44, %v2823_v43 }
  0xe8   : > { %v740_v55 = vrot.slane %v598_v44, %v2827_v45  ;;  %v998_v59 = vmin.f32 %v997_v47, 1.0  ;;  %v1389_v6 = vmax.f32 %v1388_v60, 0.0  ;;  %v1589_v14 = vand.u32 2147483647, %v1588_v8 }
  0xe9   : > { %v748_v56 = vrot.slane %v728_v52, %v2815_v39  ;;  %v752_v57 = vrot.slane %v732_v53, %v2815_v39  ;;  %v933_v61 = vrot.slane %v799_v51, %v2819_v41  ;;  %v756_v63 = vrot.slane %v736_v54, %v2815_v39 }
  0xea   : > { %v760_v0 = vrot.slane %v740_v55, %v2815_v39  ;;  %v929_v1 = vrot.slane %v799_v51, %v2815_v39  ;;  %v999_v5 = vsub.f32 1.0, %v998_v59  ;;  %v941_v10 = vrot.slane %v799_v51, %v2827_v45 }
  0xeb   : > { %765 = vrot.lane.b32.xlu0 %v748_v56, %s2618_s13  ;;  %767 = vrot.lane.b32.xlu1 %v752_v57, %s2618_s13  ;;  %v953_v7 = vrot.slane %v933_v61, %v2815_v39  ;;  %v937_v11 = vrot.slane %v799_v51, %v2823_v43  ;;  %v1390_v13 = vmin.f32 %v1389_v6, 1.0  ;;  %v1590_v22 = vmax.f32 %v1589_v14, 0.0 }
  0xec   : > { %v949_v9 = vrot.slane %v929_v1, %v2815_v39  ;;  %v1133_v15 = vrot.slane %v999_v5, %v2819_v41  ;;  %v961_v2 = vrot.slane %v941_v10, %v2815_v39  ;;  %v1129_v17 = vrot.slane %v999_v5, %v2815_v39 }
  0xed   : > { %v957_v16 = vrot.slane %v937_v11, %v2815_v39  ;;  %v1391_v21 = vsub.f32 1.0, %v1390_v13  ;;  %v1141_v24 = vrot.slane %v999_v5, %v2827_v45  ;;  %v1137_v26 = vrot.slane %v999_v5, %v2823_v43 }
  0xee   : > { %v1153_v23 = vrot.slane %v1133_v15, %v2815_v39  ;;  %v1149_v25 = vrot.slane %v1129_v17, %v2815_v39  ;;  %v1789_v27 = vsub.f32 %v1782_v18, %v1787_v19  ;;  %v1591_v30 = vmin.f32 %v1590_v22, 1.0 }
  0xef   : > { %769 = vrot.lane.b32.xlu0 %v756_v63, %s2618_s13  ;;  %771 = vrot.lane.b32.xlu1 %v760_v0, %s2618_s13  ;;  %v1525_v31 = vrot.slane %v1391_v21, %v2819_v41  ;;  %v1161_v33 = vrot.slane %v1141_v24, %v2815_v39  ;;  %v1157_v34 = vrot.slane %v1137_v26, %v2815_v39  ;;  %v428_v26 = vpop.permute.xlu1 %427  ;;  %s351_s13 = sand.u32 1, %s2596_s22  }
  0xf0   : > { %v1790_v35 = vand.u32 2147483647, %v1789_v27  ;;  %v1521_v36 = vrot.slane %v1391_v21, %v2815_v39  ;;  %v1988_v37 = vsel %vm1987_vm10, %v1986_v29, %v1985_v20  ;;  %v1592_v38 = vsub.f32 1.0, %v1591_v30  ;;  %v424_v29 = vld [vmem:[#allocation3] sm:$0x7] }
  0xf1   : > { %v1545_v40 = vrot.slane %v1525_v31, %v2815_v39  ;;  %v1533_v42 = vrot.slane %v1391_v21, %v2827_v45  ;;  %v1990_v47 = vsub.f32 %v1983_v32, %v1988_v37  ;;  %v1529_v48 = vrot.slane %v1391_v21, %v2823_v43 }
  0xf2   : > { %v1791_v44 = vmax.f32 %v1790_v35, 0.0  ;;  %v1541_v46 = vrot.slane %v1521_v36, %v2815_v39  ;;  %v1726_v55 = vrot.slane %v1592_v38, %v2819_v41  ;;  %v1722_v61 = vrot.slane %v1592_v38, %v2815_v39 }
  0xf3   : > { %968 = vrot.lane.b32.xlu1 %v953_v7, %s2619_s17  ;;  %966 = vrot.lane.b32.xlu0 %v949_v9, %s2619_s17  ;;  %v1553_v54 = vrot.slane %v1533_v42, %v2815_v39  ;;  %v1991_v59 = vand.u32 2147483647, %v1990_v47  ;;  %v1549_v60 = vrot.slane %v1529_v48, %v2815_v39  ;;  %v1734_v0 = vrot.slane %v1592_v38, %v2827_v45  ;;  %v3055_v28 = vpop.permute.xlu1 %1360 }
  0xf4   : > { %v1792_v58 = vmin.f32 %v1791_v44, 1.0  ;;  %v1746_v63 = vrot.slane %v1726_v55, %v2815_v39  ;;  %v1742_v5 = vrot.slane %v1722_v61, %v2815_v39  ;;  %v1730_v6 = vrot.slane %v1592_v38, %v2823_v43 }
  0xf5   : > { %v1992_v4 = vmax.f32 %v1991_v59, 0.0  ;;  %v1754_v7 = vrot.slane %v1734_v0, %v2815_v39  ;;  %v429_v30 = vrot.slane %v428_v26, 2  ;;  %v425_v31 = vunpack.c.l.bf16 %v424_v29 }
  0xf6   : > { %v1793_v1 = vsub.f32 1.0, %v1792_v58  ;;  %v1750_v9 = vrot.slane %v1730_v6, %v2815_v39 }
  0xf7   : > { %972 = vrot.lane.b32.xlu1 %v961_v2, %s2619_s17  ;;  %970 = vrot.lane.b32.xlu0 %v957_v16, %s2619_s17  ;;  %v1993_v8 = vmin.f32 %v1992_v4, 1.0  ;;  %s2454_s17 = smul.u32 24, %s351_s13 }
  0xf8   : > { %v1927_v10 = vrot.slane %v1793_v1, %v2819_v41  ;;  %v1923_v11 = vrot.slane %v1793_v1, %v2815_v39  ;;  %v1935_v3 = vrot.slane %v1793_v1, %v2827_v45  ;;  %v1931_v15 = vrot.slane %v1793_v1, %v2823_v43 }
  0xf9   : > { %v1994_v12 = vsub.f32 1.0, %v1993_v8 }
  0xfa   : > { %v1947_v13 = vrot.slane %v1927_v10, %v2815_v39  ;;  %v1943_v14 = vrot.slane %v1923_v11, %v2815_v39  ;;  %v1955_v2 = vrot.slane %v1935_v3, %v2815_v39  ;;  %v1951_v17 = vrot.slane %v1931_v15, %v2815_v39 }
  0xfb   : > { %1168 = vrot.lane.b32.xlu1 %v1153_v23, %s2620_s18  ;;  %1166 = vrot.lane.b32.xlu0 %v1149_v25, %s2620_s18  ;;  %v2124_v16 = vrot.slane %v1994_v12, %v2815_v39  ;;  %v2132_v18 = vrot.slane %v1994_v12, %v2823_v43  ;;  %v2128_v20 = vrot.slane %v1994_v12, %v2819_v41  ;;  %v3051_v25 = vpop.permute.xlu0 %1358 }
  0xfc   : > { %v2136_v23 = vrot.slane %v1994_v12, %v2827_v45  ;;  %v3059_v45 = vpop.permute.xlu1 %1364 }
  0xfd   : > { %v2144_v19 = vrot.slane %v2124_v16, %v2815_v39  ;;  %v2152_v21 = vrot.slane %v2132_v18, %v2815_v39  ;;  %v2148_v22 = vrot.slane %v2128_v20, %v2815_v39 }
  0xfe   : > { %v2156_v24 = vrot.slane %v2136_v23, %v2815_v39 }
  0xff   : > { %1172 = vrot.lane.b32.xlu1 %v1161_v33, %s2620_s18  ;;  %1170 = vrot.lane.b32.xlu0 %v1157_v34, %s2620_s18  ;;  %v3003_v49 = vpop.f32.mrb[0].mxu0  ;;  %v3053_v27 = vpop.permute.xlu0 %1362  ;;  %v431_v33 = vsel %vm430_vm1, %v428_v26, %v429_v30  ;;  %s2457_s18 = smul.u32 384, %s2604_s24  ;;  %s2195_s24 = scalar_lea.sflag [#allocation5], %s351_s13 }
 0x100   : > { %v3005_v50 = vpop.f32.mrb[1].mxu0  ;;  %v3007_v51 = vpop.f32.mrb[0].mxu1  ;;  %v433_v34 = vsub.f32 %v425_v31, %v431_v33 }
 0x101   : > { %v508_v52 = vpop.f32.mrb[2].mxu0  ;;  %v2404_v53 = vpop.f32.mrb[1].mxu1  ;;  %s3122_s19 = scalar_lea.hbm %s3177_s6, %s2457_s18 }
 0x102   : > { %v509_v56 = vpop.f32.mrb[3].mxu0  ;;  %v548_v57 = vpop.f32.mrb[2].mxu1  ;;  %v434_v37 = vand.u32 2147483647, %v433_v34 }
 0x103   : > { %1560 = vrot.lane.b32.xlu1 %v1545_v40, %s2622_s20  ;;  %1558 = vrot.lane.b32.xlu0 %v1541_v46, %s2622_s20  ;;  %v2405_v62 = vpop.f32.mrb[3].mxu1  ;;  %v3057_v32 = vpop.permute.xlu0 %2185 }
 0x104   : > { %v435_v42 = vmax.f32 %v434_v37, 0.0 }
 0x106   : > { %v436_v47 = vmin.f32 %v435_v42, 1.0 }
 0x107   : > { %1564 = vrot.lane.b32.xlu1 %v1553_v54, %s2622_s20  ;;  %1562 = vrot.lane.b32.xlu0 %v1549_v60, %s2622_s20  ;;  %s353_s20 = scalar_lea.vmem [#allocation4], %s2454_s17 }
 0x108   : > { %v437_v52 = vsub.f32 1.0, %v436_v47 }
 0x10a   : > { %v555_v55 = vrot.slane %v437_v52, %v2815_v39  ;;  %v559_v56 = vrot.slane %v437_v52, %v2819_v41  ;;  %v563_v57 = vrot.slane %v437_v52, %v2823_v43 }
 0x10b   : > { %1761 = vrot.lane.b32.xlu1 %v1746_v63, %s2623_s27  ;;  %1759 = vrot.lane.b32.xlu0 %v1742_v5, %s2623_s27 }
 0x10c   : > { %v570_v60 = vrot.slane %v555_v55, %v2815_v39  ;;  %v574_v61 = vrot.slane %v559_v56, %v2815_v39  ;;  %v578_v63 = vrot.slane %v563_v57, %v2815_v39 }
 0x10e   : > { %v579_v5 = vmul.f32 %v570_v60, %v3003_v49  ;;  %v581_v3 = vmul.f32 %v578_v63, %v3007_v51 }
 0x10f   : > { %1765 = vrot.lane.b32.xlu1 %v1754_v7, %s2623_s27  ;;  %1763 = vrot.lane.b32.xlu0 %v1750_v9, %s2623_s27  ;;  %v580_v7 = vmul.f32 %v574_v61, %v3005_v50  ;;  %s2211_s27 = sshll.u32 %s353_s20, 4  ;;  %s3124_s27 = int_to_ptr.vmem [resolvable:$true] %s2211_s27 }
 0x110   : > { %s2534_s14 = scalar_lea.vmem %s3124_s27, 384  ;;  %p2541_p1 = scmp.lt.s32.totalorder %s3124_s27, %s2539_s16 }
 0x111   : > { %p2535_p12 = scmp.ne.s32.totalorder %s3124_s27, %s2534_s14  ;;  %p2542_p2 = scmp.lt.s32.totalorder %s2540_s8, %s2534_s14 }
 0x113   : > { %1962 = vrot.lane.b32.xlu1 %v1947_v13, %s2624_s28  ;;  %1960 = vrot.lane.b32.xlu0 %v1943_v14, %s2624_s28  ;;  %p2536_p13 = pnand %p2535_p12, %p2707_p4  ;;  %p2543_p3 = por %p2542_p2, %p2541_p1 }
 0x115   : > { %p2537_p0 = pneg %p2536_p13 }
 0x117   : > { %1966 = vrot.lane.b32.xlu1 %v1955_v2, %s2624_s28  ;;  %1964 = vrot.lane.b32.xlu0 %v1951_v17, %s2624_s28  ;;  %p2544_p5 = pnand %p2543_p3, %p2537_p0 }
 0x11b   : > { %2161 = vrot.lane.b32.xlu1 %v2144_v19, %s2625_s30  ;;  %2165 = vrot.lane.b32.xlu0 %v2152_v21, %s2625_s30 }
 0x11f   : > { %2163 = vrot.lane.b32.xlu1 %v2148_v22, %s2625_s30 }
 0x123   : > { %2167 = vrot.lane.b32.xlu1 %v2156_v24, %s2625_s30 }
 0x15d   : > { %v766_v35 = vpop.permute.xlu0 %765  ;;  %v768_v36 = vpop.permute.xlu1 %767 }
 0x15e   : > { %v774_v62 = vsel %vm627_vm14, %v766_v35, %v768_v36 }
 0x161   : > { %v770_v38 = vpop.permute.xlu0 %769  ;;  %v772_v40 = vpop.permute.xlu1 %771 }
 0x162   : > { %v775_v0 = vsel %vm627_vm14, %v768_v36, %v770_v38  ;;  %v776_v10 = vsel %vm627_vm14, %v770_v38, %v772_v40 }
 0x165   : > { %v967_v44 = vpop.permute.xlu0 %966  ;;  %v969_v46 = vpop.permute.xlu1 %968 }
 0x166   : > { %v975_v18 = vsel %vm828_vm15, %v967_v44, %v969_v46 }
 0x169   : > { %v973_v48 = vpop.permute.xlu1 %972  ;;  %v971_v53 = vpop.permute.xlu0 %970 }
 0x16a   : > { %v976_v50 = vsel %vm828_vm15, %v969_v46, %v971_v53  ;;  %v977_v26 = vsel %vm828_vm15, %v971_v53, %v973_v48 }
 0x16d   : > { %v1169_v54 = vpop.permute.xlu1 %1168  ;;  %v1167_v58 = vpop.permute.xlu0 %1166 }
 0x16e   : > { %v1174_v40 = vsel %vm591_vm0, %v1167_v58, %v1169_v54 }
 0x171   : > { %v1173_v59 = vpop.permute.xlu1 %1172  ;;  %v1171_v43 = vpop.permute.xlu0 %1170 }
 0x172   : > { %v1175_v42 = vsel %vm591_vm0, %v1169_v54, %v1171_v43  ;;  %v1176_v53 = vsel %vm591_vm0, %v1171_v43, %v1173_v59  ;;  %v1366_v54 = vsel %vm430_vm1, %v3051_v25, %v3055_v28  ;;  %v1367_v59 = vsel %vm430_vm1, %v3055_v28, %v3053_v27 }
 0x175   : > { %v3070_v1 = vpop.permute.xlu1 %1560  ;;  %v1559_v20 = vpop.permute.xlu0 %1558 }
 0x176   : > { %v677_v4 = vpop.f32.mrb[4].mxu0  ;;  %v1567_v28 = vsel %vm1420_vm2, %v1559_v20, %v3070_v1 }
 0x177   : > { %v780_v41 = vmul.f32 %v774_v62, %v677_v4  ;;  %v679_v6 = vpop.f32.mrb[5].mxu0 }
 0x178   : > { %v781_v8 = vmul.f32 %v775_v0, %v679_v6  ;;  %v718_v9 = vpop.f32.mrb[4].mxu1  ;;  %v681_v11 = vpop.f32.mrb[6].mxu0 }
 0x179   : > { %v783_v39 = vadd.f32 %v780_v41, %v579_v5  ;;  %v782_v12 = vmul.f32 %v776_v10, %v718_v9  ;;  %v2410_v13 = vpop.f32.mrb[5].mxu1  ;;  %v682_v14 = vpop.f32.mrb[7].mxu0  ;;  %v1368_v11 = vsel %vm430_vm1, %v3053_v27, %v3059_v45 }
 0x17a   : > { %v784_v15 = vadd.f32 %v781_v8, %v580_v7  ;;  %v721_v2 = vpop.f32.mrb[6].mxu1  ;;  %v3076_v16 = vpop.permute.xlu1 %1564 }
 0x17b   : > { %v785_v49 = vadd.f32 %v782_v12, %v581_v3  ;;  %v2411_v17 = vpop.f32.mrb[7].mxu1  ;;  %v1563_v46 = vpop.permute.xlu0 %1562 }
 0x17e   : > { %v878_v19 = vpop.f32.mrb[8].mxu0  ;;  %v3080_v23 = vpop.permute.xlu1 %1761 }
 0x17f   : > { %v981_v21 = vmul.f32 %v975_v18, %v878_v19  ;;  %v880_v22 = vpop.f32.mrb[9].mxu0  ;;  %v1760_v6 = vpop.permute.xlu0 %1759 }
 0x180   : > { %v982_v51 = vmul.f32 %v976_v50, %v880_v22  ;;  %v919_v24 = vpop.f32.mrb[8].mxu1  ;;  %v882_v29 = vpop.f32.mrb[10].mxu0 }
 0x181   : > { %v984_v30 = vadd.f32 %v981_v21, %v783_v39  ;;  %v983_v31 = vmul.f32 %v977_v26, %v919_v24  ;;  %v2416_v33 = vpop.f32.mrb[9].mxu1  ;;  %v883_v34 = vpop.f32.mrb[11].mxu0  ;;  %v1568_v21 = vsel %vm1420_vm2, %v3070_v1, %v1563_v46  ;;  %v1768_v1 = vsel %vm1621_vm3, %v1760_v6, %v3080_v23 }
 0x182   : > { %v985_v35 = vadd.f32 %v982_v51, %v784_v15  ;;  %v922_v36 = vpop.f32.mrb[10].mxu1  ;;  %v1766_v55 = vpop.permute.xlu1 %1765  ;;  %v1569_v51 = vsel %vm1420_vm2, %v1563_v46, %v3076_v16 }
 0x183   : > { %v986_v37 = vadd.f32 %v983_v31, %v785_v49  ;;  %v2417_v38 = vpop.f32.mrb[11].mxu1  ;;  %v1764_v18 = vpop.permute.xlu0 %1763 }
 0x186   : > { %v1078_v44 = vpop.f32.mrb[12].mxu0  ;;  %v1963_v43 = vpop.permute.xlu1 %1962 }
 0x187   : > { %v1180_v47 = vmul.f32 %v1174_v40, %v1078_v44  ;;  %v1080_v52 = vpop.f32.mrb[13].mxu0  ;;  %v1961_v36 = vpop.permute.xlu0 %1960 }
 0x188   : > { %v1181_v56 = vmul.f32 %v1175_v42, %v1080_v52  ;;  %v1119_v48 = vpop.f32.mrb[12].mxu1  ;;  %v1082_v57 = vpop.f32.mrb[14].mxu0  ;;  %v1769_v42 = vsel %vm1621_vm3, %v3080_v23, %v1764_v18 }
 0x189   : > { %v1183_v60 = vadd.f32 %v1180_v47, %v984_v30  ;;  %v1182_v61 = vmul.f32 %v1176_v53, %v1119_v48  ;;  %v2422_v62 = vpop.f32.mrb[13].mxu1  ;;  %v1083_v63 = vpop.f32.mrb[15].mxu0  ;;  %v1770_v47 = vsel %vm1621_vm3, %v1764_v18, %v1766_v55 }
 0x18a   : > { %v1184_v0 = vadd.f32 %v1181_v56, %v985_v35  ;;  %v1122_v4 = vpop.f32.mrb[14].mxu1  ;;  %v1967_v27 = vpop.permute.xlu1 %1966 }
 0x18b   : > { %v1185_v5 = vadd.f32 %v1182_v61, %v986_v37  ;;  %v2423_v58 = vpop.f32.mrb[15].mxu1 }
 0x18e   : > { %v1270_v41 = vpop.f32.mrb[16].mxu0  ;;  %v2162_v16 = vpop.permute.xlu1 %2161 }
 0x18f   : > { %v1372_v7 = vmul.f32 %v1366_v54, %v1270_v41  ;;  %v1272_v8 = vpop.f32.mrb[17].mxu0 }
 0x190   : > { %v1373_v9 = vmul.f32 %v1367_v59, %v1272_v8  ;;  %v1311_v10 = vpop.f32.mrb[16].mxu1  ;;  %v1274_v3 = vpop.f32.mrb[18].mxu0 }
 0x191   : > { %v1375_v39 = vadd.f32 %v1372_v7, %v1183_v60  ;;  %v1374_v12 = vmul.f32 %v1368_v11, %v1311_v10  ;;  %v2428_v13 = vpop.f32.mrb[17].mxu1  ;;  %v1275_v14 = vpop.f32.mrb[19].mxu0 }
 0x192   : > { %v1376_v25 = vadd.f32 %v1373_v9, %v1184_v0  ;;  %v1314_v15 = vpop.f32.mrb[18].mxu1  ;;  %v1965_v0 = vpop.permute.xlu0 %1964 }
 0x193   : > { %v1377_v2 = vadd.f32 %v1374_v12, %v1185_v5  ;;  %v2429_v49 = vpop.f32.mrb[19].mxu1  ;;  %v1969_v5 = vsel %vm1822_vm4, %v1961_v36, %v1963_v43  ;;  %v2164_v23 = vpop.permute.xlu1 %2163  ;;  %v1970_v55 = vsel %vm1822_vm4, %v1963_v43, %v1965_v0  ;;  %v1971_v7 = vsel %vm1822_vm4, %v1965_v0, %v1967_v27 }
 0x194   : > { %v2170_v15 = vsel %vm2023_vm5, %v2162_v16, %v2164_v23 }
 0x196   : > { %v1470_v17 = vpop.f32.mrb[20].mxu0  ;;  %v2166_v14 = vpop.permute.xlu0 %2165 }
 0x197   : > { %v1573_v50 = vmul.f32 %v1567_v28, %v1470_v17  ;;  %v1472_v19 = vpop.f32.mrb[21].mxu0  ;;  %v2171_v17 = vsel %vm2023_vm5, %v2164_v23, %v2166_v14 }
 0x198   : > { %v1574_v45 = vmul.f32 %v1568_v21, %v1472_v19  ;;  %v1511_v22 = vpop.f32.mrb[20].mxu1  ;;  %v1474_v24 = vpop.f32.mrb[22].mxu0 }
 0x199   : > { %v1576_v26 = vadd.f32 %v1573_v50, %v1375_v39  ;;  %v1575_v29 = vmul.f32 %v1569_v51, %v1511_v22  ;;  %v2434_v30 = vpop.f32.mrb[21].mxu1  ;;  %v1475_v31 = vpop.f32.mrb[23].mxu0 }
 0x19a   : > { %v1577_v33 = vadd.f32 %v1574_v45, %v1376_v25  ;;  %v1514_v34 = vpop.f32.mrb[22].mxu1  ;;  %v2168_v25 = vpop.permute.xlu1 %2167 }
 0x19b   : > { %v1578_v20 = vadd.f32 %v1575_v29, %v1377_v2  ;;  %v2435_v35 = vpop.f32.mrb[23].mxu1  ;;  %v2172_v50 = vsel %vm2023_vm5, %v2166_v14, %v2168_v25 }
 0x19e   : > { %v1671_v37 = vpop.f32.mrb[24].mxu0 }
 0x19f   : > { %v1774_v38 = vmul.f32 %v1768_v1, %v1671_v37  ;;  %v1673_v40 = vpop.f32.mrb[25].mxu0 }
 0x1a0   : > { %v1775_v44 = vmul.f32 %v1769_v42, %v1673_v40  ;;  %v1712_v46 = vpop.f32.mrb[24].mxu1  ;;  %v1675_v52 = vpop.f32.mrb[26].mxu0 }
 0x1a1   : > { %v1777_v56 = vadd.f32 %v1774_v38, %v1576_v26  ;;  %v1776_v48 = vmul.f32 %v1770_v47, %v1712_v46  ;;  %v2440_v53 = vpop.f32.mrb[25].mxu1  ;;  %v1676_v57 = vpop.f32.mrb[27].mxu0 }
 0x1a2   : > { %v1778_v60 = vadd.f32 %v1775_v44, %v1577_v33  ;;  %v1715_v61 = vpop.f32.mrb[26].mxu1 }
 0x1a3   : > { %v1779_v62 = vadd.f32 %v1776_v48, %v1578_v20  ;;  %v2441_v63 = vpop.f32.mrb[27].mxu1 }
 0x1a6   : > { %v1872_v4 = vpop.f32.mrb[28].mxu0 }
 0x1a7   : > { %v1975_v58 = vmul.f32 %v1969_v5, %v1872_v4  ;;  %v1874_v41 = vpop.f32.mrb[29].mxu0 }
 0x1a8   : > { %v1976_v54 = vmul.f32 %v1970_v55, %v1874_v41  ;;  %v1913_v6 = vpop.f32.mrb[28].mxu1  ;;  %v1876_v8 = vpop.f32.mrb[30].mxu0 }
 0x1a9   : > { %v1978_v59 = vadd.f32 %v1975_v58, %v1777_v56  ;;  %v1977_v9 = vmul.f32 %v1971_v7, %v1913_v6  ;;  %v2446_v10 = vpop.f32.mrb[29].mxu1  ;;  %v1877_v11 = vpop.f32.mrb[31].mxu0 }
 0x1aa   : > { %v1979_v3 = vadd.f32 %v1976_v54, %v1778_v60  ;;  %v1916_v39 = vpop.f32.mrb[30].mxu1 }
 0x1ab   : > { %v1980_v12 = vadd.f32 %v1977_v9, %v1779_v62  ;;  %v2447_v13 = vpop.f32.mrb[31].mxu1 }
 0x1ae   : > { %v2073_v43 = vpop.f32.mrb[32].mxu0 }
 0x1af   : > { %v2176_v2 = vmul.f32 %v2170_v15, %v2073_v43  ;;  %v2075_v49 = vpop.f32.mrb[33].mxu0 }
 0x1b0   : > { %v2177_v28 = vmul.f32 %v2171_v17, %v2075_v49  ;;  %v2114_v18 = vpop.f32.mrb[32].mxu1  ;;  %v2077_v19 = vpop.f32.mrb[34].mxu0 }
 0x1b1   : > { %v2179_v21 = vadd.f32 %v2176_v2, %v1978_v59  ;;  %v2178_v27 = vmul.f32 %v2172_v50, %v2114_v18  ;;  %v2452_v45 = vpop.f32.mrb[33].mxu1  ;;  %v2078_v22 = vpop.f32.mrb[35].mxu0 }
 0x1b2   : > { %v2180_v51 = vadd.f32 %v2177_v28, %v1979_v3  ;;  %v2117_v24 = vpop.f32.mrb[34].mxu1 }
 0x1b3   : > { %v2188_v26 = vadd.f32 %v3057_v32, %v2179_v21  ;;  %v2181_v29 = vadd.f32 %v2178_v27, %v1980_v12  ;;  %v2453_v30 = vpop.f32.mrb[35].mxu1 }
 0x1b4   : > { %v2189_v31 = vadd.f32 %v3057_v32, %v2180_v51 }
 0x1b5   : > { %2191 = vst [vmem:[%s353_s20] sm:$0xff] %v2188_v26  ;;  %v2190_v33 = vadd.f32 %v3057_v32, %v2181_v29 }
 0x1b6   : > { %2192 = vst [vmem:[%s353_s20 + $0x8] sm:$0xff] %v2189_v31 }
 0x1b7   : > { %2193 = vst [vmem:[%s353_s20 + $0x10] sm:$0xff] %v2190_v33 }
 0x1b8   : > { %2547 = shalt.err (!%p2544_p5)
}
 0x1b9   : > { %s2548_s11 = scalar_lea.hbm %s3122_s19, 384  ;;  %s2552_s17 = scalar_lea.hbm %s3177_s6, 768 }
 0x1ba   : > { %p2549_p6 = scmp.ne.s32.totalorder %s3122_s19, %s2548_s11  ;;  %p2553_p10 = scmp.lt.u32.totalorder %s3122_s19, %s3177_s6 }
 0x1bb   : > { %p2554_p11 = scmp.lt.u32.totalorder %s2552_s17, %s2548_s11  ;;  %p2556_p13 = scmp.lt.u32.totalorder %s2548_s11, %s3122_s19 }
 0x1bc   : > { %p2550_p7 = pnand %p2549_p6, %p2707_p4 }
 0x1bd   : > { %p2555_p12 = por %p2554_p11, %p2553_p10 }
 0x1be   : > { %p2551_p9 = pneg %p2550_p7 }
 0x1bf   : > { %p2557_p0 = por %p2556_p13, %p2555_p12 }
 0x1c1   : > { %p2558_p1 = pnand %p2557_p0, %p2551_p9 }
 0x1c3   : > { %2561 = shalt.err (!%p2558_p1)
}
 0x1c4   : > { %2458 = dma.vmem_to_hbm [thread:$0]  (%p2707_p4), %s3124_s27, 384, %s3122_s19, %s2195_s24  }
 0x1c5 PF: > { %p2465_p2 = scmp.ge.s32.totalorder %s2612_s26, 2  ;;  %s2223_s28 = sand.u32 1, %s2592_s21  }
 0x1c6   : > { %s2224_s30 = scalar_lea.sflag [#allocation5], %s2223_s28 }
 0x1c7   : > { %p2461_p3 = pnand %p2465_p2, %p2714_p8 }
 0x1c9   : > { %2587 = dma.done.wait (!%p2461_p3), %s2224_s30, 384  }
 0x1ca   : > { %2589 = vsyncadd (!%p2461_p3), %s2224_s30, 4294966912  ;;  %s19_s26 = sadd.s32 1, %s2612_s26   ;;  %s3186_s21 = smov %s2596_s22 }
 0x1cb   : > { %p16_p5 = scmp.ge.s32.totalorder %s19_s26, 4   ;;  %s3187_s22 = smov %s2600_s23 }
 0x1cc   : > { %s3188_s23 = smov %s2720_s10  ;;  %s3189_s24 = smov %s2608_s25 }
 0x1cd   : > { %s3190_s25 = smov %s3192_s29  ;;  %18 = sbr.rel (!%p16_p5) target bundleno = 4 (0x4), region = 96 }
 0x1d4   :  { %2229 = vsyncpa [#allocation5], 1 }
 0x1d5   :  { %2231 = vsyncpa [#allocation5 + $0x1], 1 }

</bundles_post_ra>
